<compile_context>
chip_gen: v5e
topology: v5e:2x2
jax: 0.10.0
libtpu: 0.0.40
codegen_flags: <defaults>
</compile_context>

<pallas_src>
import jax
import jax.numpy as jnp
from jax.experimental import pallas as pl
from jax.experimental.pallas import tpu as pltpu

_EPS = 1e-5


# --------------------------------------------------------------------------
# Kernels (all operate channel-major on one (channels, T) spatial tile)
# --------------------------------------------------------------------------

def _pass1_kernel(x_ref, w_in_ref, sum_ref, sq_ref):
    """h = W_in @ x; accumulate per-channel sum / sum-of-squares for BN1."""
    s = pl.program_id(1)

    @pl.when(s == 0)
    def _():
        sum_ref[...] = jnp.zeros_like(sum_ref)
        sq_ref[...] = jnp.zeros_like(sq_ref)

    h = jnp.dot(w_in_ref[...], x_ref[...].astype(jnp.bfloat16),
                preferred_element_type=jnp.float32)          # (hdim, T) f32
    sum_ref[...] += jnp.sum(h, axis=-1, keepdims=True)
    sq_ref[...] += jnp.sum(h * h, axis=-1, keepdims=True)


def _pass2_kernel(x_ref, w_in_ref, a1_ref, c1_ref, sqz_ref):
    """Squeeze: accumulate per-sample spatial sums of relu(bn1(h))."""
    s = pl.program_id(1)

    @pl.when(s == 0)
    def _():
        sqz_ref[...] = jnp.zeros_like(sqz_ref)

    h = jnp.dot(w_in_ref[...], x_ref[...].astype(jnp.bfloat16),
                preferred_element_type=jnp.float32)
    h = jnp.maximum(h * a1_ref[...] + c1_ref[...], 0.0)       # fused BN1 + ReLU
    sqz_ref[...] += jnp.sum(h, axis=-1, keepdims=True)


def _pass3_kernel(pooled_ref, x_ref, w_in_ref, a1_ref, c1_ref,
                  wfc1_ref, wfc2_ref, w_out_ref, sum_ref, sq_ref, gate_ref):
    """Gate, o = W_out @ (h * gate); accumulate BN2 sum / sum-of-squares."""
    s = pl.program_id(1)

    @pl.when(s == 0)
    def _():
        sum_ref[...] = jnp.zeros_like(sum_ref)
        sq_ref[...] = jnp.zeros_like(sq_ref)
        # Excitation MLP: once per sample (hoisted out of the spatial loop).
        y = pooled_ref[...]                                   # (hdim, 1) f32
        z = jnp.maximum(
            jnp.dot(wfc1_ref[...], y, preferred_element_type=jnp.float32), 0.0)
        g = jnp.dot(wfc2_ref[...], z, preferred_element_type=jnp.float32)
        gate_ref[...] = 1.0 / (1.0 + jnp.exp(-g))             # sigmoid (EUP)

    h = jnp.dot(w_in_ref[...], x_ref[...].astype(jnp.bfloat16),
                preferred_element_type=jnp.float32)
    h = jnp.maximum(h * a1_ref[...] + c1_ref[...], 0.0)
    hg = (h * gate_ref[...]).astype(jnp.bfloat16)
    o = jnp.dot(w_out_ref[...], hg, preferred_element_type=jnp.float32)  # (C, T)
    sum_ref[...] += jnp.sum(o, axis=-1, keepdims=True)
    sq_ref[...] += jnp.sum(o * o, axis=-1, keepdims=True)


def _pass4_kernel(pooled_ref, x_ref, w_in_ref, a1_ref, c1_ref,
                  wfc1_ref, wfc2_ref, w_out_ref, a2_ref, c2_ref,
                  out_ref, gate_ref):
    """Recompute the pipeline, apply folded BN2 + ReLU, lane-dense store."""
    s = pl.program_id(1)

    @pl.when(s == 0)
    def _():
        y = pooled_ref[...]
        z = jnp.maximum(
            jnp.dot(wfc1_ref[...], y, preferred_element_type=jnp.float32), 0.0)
        g = jnp.dot(wfc2_ref[...], z, preferred_element_type=jnp.float32)
        gate_ref[...] = 1.0 / (1.0 + jnp.exp(-g))

    h = jnp.dot(w_in_ref[...], x_ref[...].astype(jnp.bfloat16),
                preferred_element_type=jnp.float32)
    h = jnp.maximum(h * a1_ref[...] + c1_ref[...], 0.0)
    hg = (h * gate_ref[...]).astype(jnp.bfloat16)
    o = jnp.dot(w_out_ref[...], hg, preferred_element_type=jnp.float32)
    out_ref[...] = jnp.maximum(o * a2_ref[...] + c2_ref[...], 0.0).astype(out_ref.dtype)


# --------------------------------------------------------------------------
# Wrapper
# --------------------------------------------------------------------------

def _pick_spatial_tile(hw):
    # Largest lane-dense tile (multiple of 128) that divides H*W; odd spatial
    # sizes fall back to a single full-width tile (allowed: block == full dim).
    for t in (2048, 1024, 512, 256, 128):
        if hw % t == 0:
            return t
    return hw


@jax.jit
def squeeze_excitation(x_nchw, params):
    """x_nchw: (B, C, H, W) float32 -> (B, C, H, W) float32."""
    B, C, H, W = x_nchw.shape
    HW = H * W
    hdim = params["w_in"].shape[0]
    rdim = params["w_fc1"].shape[0]
    T = _pick_spatial_tile(HW)
    S = HW // T
    grid = (B, S)

    # Channel-major: plain reshape, no NCHW<->NHWC transpose round trip.
    x = x_nchw.reshape(B, C, HW)

    # bf16 copies of the conv weights (MXU operands); BN / gate math stays f32.
    w_in = params["w_in"].astype(jnp.bfloat16)     # (hdim, C)
    w_out = params["w_out"].astype(jnp.bfloat16)   # (C, hdim)
    w_fc1 = params["w_fc1"].astype(jnp.float32)    # (rdim, hdim)  tiny, keep f32
    w_fc2 = params["w_fc2"].astype(jnp.float32)    # (hdim, rdim)

    x_spec = pl.BlockSpec((None, C, T), lambda b, s: (b, 0, s))
    out_spec = pl.BlockSpec((None, C, T), lambda b, s: (b, 0, s))
    full = lambda shp: pl.BlockSpec(shp, lambda b, s: (0,) * len(shp))
    per_b = lambda rows: pl.BlockSpec((None, rows, 1), lambda b, s: (b, 0, 0))

    cp = pltpu.CompilerParams(
        dimension_semantics=("parallel", "arbitrary"),
        vmem_limit_bytes=32 * 1024 * 1024,
    )
    n = float(B * HW)

    # ---- pass 1: conv1x1_in matmul + BN1 statistics -----------------------
    sum1, sq1 = pl.pallas_call(
        _pass1_kernel,
        grid=grid,
        in_specs=[x_spec, full((hdim, C))],
        out_specs=[per_b(hdim), per_b(hdim)],
        out_shape=[jax.ShapeDtypeStruct((B, hdim, 1), jnp.float32)] * 2,
        compiler_params=cp,
    )(x, w_in)

    mean1 = jnp.sum(sum1, axis=0)[:, 0] / n                       # (hdim,)
    var1 = jnp.maximum(jnp.sum(sq1, axis=0)[:, 0] / n - mean1 * mean1, 0.0)
    rstd1 = jax.lax.rsqrt(var1 + _EPS)
    a1 = (params["g1"] * rstd1)[:, None]                          # folded BN1 scale
    c1 = (params["b1"] - mean1 * params["g1"] * rstd1)[:, None]   # folded BN1 shift

    # ---- pass 2: squeeze (per-sample mean of relu(bn1(h))) ----------------
    sqz = pl.pallas_call(
        _pass2_kernel,
        grid=grid,
        in_specs=[x_spec, full((hdim, C)), full((hdim, 1)), full((hdim, 1))],
        out_specs=per_b(hdim),
        out_shape=jax.ShapeDtypeStruct((B, hdim, 1), jnp.float32),
        compiler_params=cp,
    )(x, w_in, a1, c1)
    pooled = sqz / float(HW)                                      # (B, hdim, 1)

    # ---- pass 3: excitation gate + conv1x1_out matmul + BN2 statistics ----
    sum2, sq2 = pl.pallas_call(
        _pass3_kernel,
        grid=grid,
        in_specs=[per_b(hdim), x_spec, full((hdim, C)), full((hdim, 1)),
                  full((hdim, 1)), full((rdim, hdim)), full((hdim, rdim)),
                  full((C, hdim))],
        out_specs=[per_b(C), per_b(C)],
        out_shape=[jax.ShapeDtypeStruct((B, C, 1), jnp.float32)] * 2,
        scratch_shapes=[pltpu.VMEM((hdim, 1), jnp.float32)],
        compiler_params=cp,
    )(pooled, x, w_in, a1, c1, w_fc1, w_fc2, w_out)

    mean2 = jnp.sum(sum2, axis=0)[:, 0] / n                       # (C,)
    var2 = jnp.maximum(jnp.sum(sq2, axis=0)[:, 0] / n - mean2 * mean2, 0.0)
    rstd2 = jax.lax.rsqrt(var2 + _EPS)
    a2 = (params["g2"] * rstd2)[:, None]
    c2 = (params["b2"] - mean2 * params["g2"] * rstd2)[:, None]

    # ---- pass 4: apply folded BN2 + ReLU, store output --------------------
    out = pl.pallas_call(
        _pass4_kernel,
        grid=grid,
        in_specs=[per_b(hdim), x_spec, full((hdim, C)), full((hdim, 1)),
                  full((hdim, 1)), full((rdim, hdim)), full((hdim, rdim)),
                  full((C, hdim)), full((C, 1)), full((C, 1))],
        out_specs=out_spec,
        out_shape=jax.ShapeDtypeStruct((B, C, HW), x.dtype),
        scratch_shapes=[pltpu.VMEM((hdim, 1), jnp.float32)],
        compiler_params=cp,
    )(pooled, x, w_in, a1, c1, w_fc1, w_fc2, w_out, a2, c2)

    return out.reshape(B, C, H, W)


# --------------------------------------------------------------------------
# Plain-JAX reference (PyTorch forward, training-mode BN, same bf16 matmuls)
# --------------------------------------------------------------------------

@jax.jit
def _reference(x, params):
    f32, bf16 = jnp.float32, jnp.bfloat16

    def conv1x1(inp, w):  # inp (B, Cin, H, W), w (Cout, Cin)
        return jnp.einsum("oc,bchw->bohw", w.astype(bf16), inp.astype(bf16),
                          preferred_element_type=f32)

    def bn_relu(t, gamma, beta):
        mu = jnp.mean(t, axis=(0, 2, 3))
        var = jnp.maximum(jnp.mean(t * t, axis=(0, 2, 3)) - mu * mu, 0.0)
        rstd = jax.lax.rsqrt(var + _EPS)
        t = (t - mu[None, :, None, None]) * rstd[None, :, None, None]
        t = t * gamma[None, :, None, None] + beta[None, :, None, None]
        return jnp.maximum(t, 0.0)

    h = bn_relu(conv1x1(x, params["w_in"]), params["g1"], params["b1"])
    y = jnp.mean(h, axis=(2, 3))                                  # (B, hdim)
    z = jnp.maximum(y @ params["w_fc1"].T, 0.0)                   # (B, rdim)
    g = 1.0 / (1.0 + jnp.exp(-(z @ params["w_fc2"].T)))           # (B, hdim)
    hg = h * g[:, :, None, None]
    return bn_relu(conv1x1(hg, params["w_out"]), params["g2"], params["b2"])


def make_params(channel, reduction=16, hdim=64, seed=0):
    ks = jax.random.split(jax.random.PRNGKey(seed), 8)
    rdim = hdim // reduction
    return {
        "w_in": 0.1 * jax.random.normal(ks[0], (hdim, channel), jnp.float32),
        "g1": 1.0 + 0.1 * jax.random.normal(ks[1], (hdim,), jnp.float32),
        "b1": 0.1 * jax.random.normal(ks[2], (hdim,), jnp.float32),
        "w_fc1": 0.1 * jax.random.normal(ks[3], (rdim, hdim), jnp.float32),
        "w_fc2": 0.1 * jax.random.normal(ks[4], (hdim, rdim), jnp.float32),
        "w_out": 0.1 * jax.random.normal(ks[5], (channel, hdim), jnp.float32),
        "g2": 1.0 + 0.1 * jax.random.normal(ks[6], (channel,), jnp.float32),
        "b2": 0.1 * jax.random.normal(ks[7], (channel,), jnp.float32),
    }


if __name__ == "__main__":
    def check(B, C, H, W, seed):
        x = jax.random.normal(jax.random.PRNGKey(seed), (B, C, H, W), jnp.float32)
        params = make_params(channel=C, seed=seed)
        out = squeeze_excitation(x, params)
        jax.block_until_ready(out)
        ref = _reference(x, params)
        assert out.shape == (B, C, H, W)
        err = float(jnp.max(jnp.abs(out - ref)))
        assert jnp.allclose(out, ref, atol=5e-3, rtol=5e-3), f"mismatch (max abs err {err})"

    check(2, 4, 16, 16, seed=0)   # single spatial tile per sample
    check(2, 4, 32, 32, seed=1)   # multiple spatial tiles: exercises stat accumulation
    print("KERNEL_OK")
</pallas_src>

<mosaic_0001>
module attributes {stable_mosaic.version = 11 : i64} {
  func.func @_pass3_kernel(%arg0: i32, %arg1: i32, %arg2: memref<1x64x1xf32, #tpu.memory_space<vmem>>, %arg3: memref<1x4x256xf32, #tpu.memory_space<vmem>>, %arg4: memref<64x4xbf16, #tpu.memory_space<vmem>>, %arg5: memref<64x1xf32, #tpu.memory_space<vmem>>, %arg6: memref<64x1xf32, #tpu.memory_space<vmem>>, %arg7: memref<4x64xf32, #tpu.memory_space<vmem>>, %arg8: memref<64x4xf32, #tpu.memory_space<vmem>>, %arg9: memref<4x64xbf16, #tpu.memory_space<vmem>>, %arg10: memref<1x4x1xf32, #tpu.memory_space<vmem>>, %arg11: memref<1x4x1xf32, #tpu.memory_space<vmem>>, %arg12: memref<64x1xf32, #tpu.memory_space<vmem>>) attributes {dimension_semantics = [#tpu.dimension_semantics<parallel>, #tpu.dimension_semantics<arbitrary>], iteration_bounds = array<i64: 2, 1>, scalar_prefetch = 0 : i64, scratch_operands = 1 : i64, tpu.core_type = #tpu.core_type<tc>, window_params = [{transform_indices = @transform_0, window_bounds = array<i64: 1, 64, 1>}, {transform_indices = @transform_1, window_bounds = array<i64: 1, 4, 256>}, {pipeline_mode = #tpu.pipeline_mode<synchronous>, transform_indices = @transform_2, window_bounds = array<i64: 64, 4>}, {pipeline_mode = #tpu.pipeline_mode<synchronous>, transform_indices = @transform_3, window_bounds = array<i64: 64, 1>}, {pipeline_mode = #tpu.pipeline_mode<synchronous>, transform_indices = @transform_4, window_bounds = array<i64: 64, 1>}, {pipeline_mode = #tpu.pipeline_mode<synchronous>, transform_indices = @transform_5, window_bounds = array<i64: 4, 64>}, {pipeline_mode = #tpu.pipeline_mode<synchronous>, transform_indices = @transform_6, window_bounds = array<i64: 64, 4>}, {pipeline_mode = #tpu.pipeline_mode<synchronous>, transform_indices = @transform_7, window_bounds = array<i64: 4, 64>}, {transform_indices = @transform_8, window_bounds = array<i64: 1, 4, 1>}, {transform_indices = @transform_9, window_bounds = array<i64: 1, 4, 1>}]} {
    %c0_i32 = arith.constant 0 : i32
    %0 = arith.cmpi eq, %arg1, %c0_i32 : i32
    %1 = arith.extui %0 : i1 to i32
    %c0_i32_0 = arith.constant 0 : i32
    %2 = arith.cmpi ne, %1, %c0_i32_0 : i32
    scf.if %2 {
      %cst_29 = arith.constant 0.000000e+00 : f32
      %39 = vector.broadcast %cst_29 : f32 to vector<4x1xf32>
      %c0_30 = arith.constant 0 : index
      %c0_31 = arith.constant 0 : index
      %c0_32 = arith.constant 0 : index
      %40 = vector.load %arg10[%c0_30, %c0_31, %c0_32] : memref<1x4x1xf32, #tpu.memory_space<vmem>>, vector<1x4x1xf32>
      %41 = vector.shape_cast %40 : vector<1x4x1xf32> to vector<4x1xf32>
      %42 = vector.shape_cast %39 : vector<4x1xf32> to vector<1x4x1xf32>
      tpu.vector_store %arg10[%c0_30, %c0_31, %c0_32], %42 {strides = array<i32>} : memref<1x4x1xf32, #tpu.memory_space<vmem>>, vector<1x4x1xf32>,
      %cst_33 = arith.constant 0.000000e+00 : f32
      %43 = vector.broadcast %cst_33 : f32 to vector<4x1xf32>
      %c0_34 = arith.constant 0 : index
      %c0_35 = arith.constant 0 : index
      %c0_36 = arith.constant 0 : index
      %44 = vector.load %arg11[%c0_34, %c0_35, %c0_36] : memref<1x4x1xf32, #tpu.memory_space<vmem>>, vector<1x4x1xf32>
      %45 = vector.shape_cast %44 : vector<1x4x1xf32> to vector<4x1xf32>
      %46 = vector.shape_cast %43 : vector<4x1xf32> to vector<1x4x1xf32>
      tpu.vector_store %arg11[%c0_34, %c0_35, %c0_36], %46 {strides = array<i32>} : memref<1x4x1xf32, #tpu.memory_space<vmem>>, vector<1x4x1xf32>,
      %c0_37 = arith.constant 0 : index
      %c0_38 = arith.constant 0 : index
      %c0_39 = arith.constant 0 : index
      %47 = vector.load %arg2[%c0_37, %c0_38, %c0_39] : memref<1x64x1xf32, #tpu.memory_space<vmem>>, vector<1x64x1xf32>
      %48 = vector.shape_cast %47 : vector<1x64x1xf32> to vector<64x1xf32>
      %c0_40 = arith.constant 0 : index
      %c0_41 = arith.constant 0 : index
      %49 = vector.load %arg7[%c0_40, %c0_41] : memref<4x64xf32, #tpu.memory_space<vmem>>, vector<4x64xf32>
      %cst_42 = arith.constant dense<0.000000e+00> : vector<4x1xf32>
      %50 = tpu.matmul %49, %48, %cst_42 {dimension_numbers = #tpu.dot_dimension_numbers<[1], [0], [0], [1], [0, 0, 1, 1], [], []>} : vector<4x64xf32>, vector<64x1xf32>, vector<4x1xf32> -> vector<4x1xf32>
      %cst_43 = arith.constant 0.000000e+00 : f32
      %51 = vector.broadcast %cst_43 : f32 to vector<4x1xf32>
      %52 = arith.maximumf %50, %51 : vector<4x1xf32>
      %c0_44 = arith.constant 0 : index
      %c0_45 = arith.constant 0 : index
      %53 = vector.load %arg8[%c0_44, %c0_45] : memref<64x4xf32, #tpu.memory_space<vmem>>, vector<64x4xf32>
      %cst_46 = arith.constant dense<0.000000e+00> : vector<64x1xf32>
      %54 = tpu.matmul %53, %52, %cst_46 {dimension_numbers = #tpu.dot_dimension_numbers<[1], [0], [0], [1], [0, 0, 1, 1], [], []>} : vector<64x4xf32>, vector<4x1xf32>, vector<64x1xf32> -> vector<64x1xf32>
      %cst_47 = arith.constant 0.000000e+00 : f32
      %55 = vector.broadcast %cst_47 : f32 to vector<64x1xf32>
      %56 = arith.subf %55, %54 : vector<64x1xf32>
      %57 = math.exp %56 : vector<64x1xf32>
      %cst_48 = arith.constant 1.000000e+00 : f32
      %58 = vector.broadcast %cst_48 : f32 to vector<64x1xf32>
      %59 = arith.addf %58, %57 : vector<64x1xf32>
      %cst_49 = arith.constant 1.000000e+00 : f32
      %60 = vector.broadcast %cst_49 : f32 to vector<64x1xf32>
      %61 = arith.divf %60, %59 : vector<64x1xf32>
      %c0_50 = arith.constant 0 : index
      %c0_51 = arith.constant 0 : index
      %62 = vector.load %arg12[%c0_50, %c0_51] : memref<64x1xf32, #tpu.memory_space<vmem>>, vector<64x1xf32>
      tpu.vector_store %arg12[%c0_50, %c0_51], %61 {strides = array<i32>} : memref<64x1xf32, #tpu.memory_space<vmem>>, vector<64x1xf32>,
    } else {
    }
    %c0 = arith.constant 0 : index
    %c0_1 = arith.constant 0 : index
    %3 = vector.load %arg4[%c0, %c0_1] : memref<64x4xbf16, #tpu.memory_space<vmem>>, vector<64x4xbf16>
    %c0_2 = arith.constant 0 : index
    %c0_3 = arith.constant 0 : index
    %c0_4 = arith.constant 0 : index
    %4 = vector.load %arg3[%c0_2, %c0_3, %c0_4] : memref<1x4x256xf32, #tpu.memory_space<vmem>>, vector<1x4x256xf32>
    %5 = vector.shape_cast %4 : vector<1x4x256xf32> to vector<4x256xf32>
    %6 = arith.truncf %5 : vector<4x256xf32> to vector<4x256xbf16>
    %cst = arith.constant dense<0.000000e+00> : vector<64x256xf32>
    %7 = tpu.matmul %3, %6, %cst {dimension_numbers = #tpu.dot_dimension_numbers<[1], [0], [0], [1], [0, 0, 1, 1], [], []>} : vector<64x4xbf16>, vector<4x256xbf16>, vector<64x256xf32> -> vector<64x256xf32>
    %c0_5 = arith.constant 0 : index
    %c0_6 = arith.constant 0 : index
    %8 = vector.load %arg5[%c0_5, %c0_6] : memref<64x1xf32, #tpu.memory_space<vmem>>, vector<64x1xf32>
    %9 = vector.broadcast %8 : vector<64x1xf32> to vector<64x256xf32>
    %10 = arith.mulf %7, %9 : vector<64x256xf32>
    %c0_7 = arith.constant 0 : index
    %c0_8 = arith.constant 0 : index
    %11 = vector.load %arg6[%c0_7, %c0_8] : memref<64x1xf32, #tpu.memory_space<vmem>>, vector<64x1xf32>
    %12 = vector.broadcast %11 : vector<64x1xf32> to vector<64x256xf32>
    %13 = arith.addf %10, %12 : vector<64x256xf32>
    %cst_9 = arith.constant 0.000000e+00 : f32
    %14 = vector.broadcast %cst_9 : f32 to vector<64x256xf32>
    %15 = arith.maximumf %13, %14 : vector<64x256xf32>
    %c0_10 = arith.constant 0 : index
    %c0_11 = arith.constant 0 : index
    %16 = vector.load %arg12[%c0_10, %c0_11] : memref<64x1xf32, #tpu.memory_space<vmem>>, vector<64x1xf32>
    %17 = vector.broadcast %16 : vector<64x1xf32> to vector<64x256xf32>
    %18 = arith.mulf %15, %17 : vector<64x256xf32>
    %19 = arith.truncf %18 : vector<64x256xf32> to vector<64x256xbf16>
    %c0_12 = arith.constant 0 : index
    %c0_13 = arith.constant 0 : index
    %20 = vector.load %arg9[%c0_12, %c0_13] : memref<4x64xbf16, #tpu.memory_space<vmem>>, vector<4x64xbf16>
    %cst_14 = arith.constant dense<0.000000e+00> : vector<4x256xf32>
    %21 = tpu.matmul %20, %19, %cst_14 {dimension_numbers = #tpu.dot_dimension_numbers<[1], [0], [0], [1], [0, 0, 1, 1], [], []>} : vector<4x64xbf16>, vector<64x256xbf16>, vector<4x256xf32> -> vector<4x256xf32>
    %c0_15 = arith.constant 0 : index
    %c0_16 = arith.constant 0 : index
    %c0_17 = arith.constant 0 : index
    %22 = vector.load %arg10[%c0_15, %c0_16, %c0_17] : memref<1x4x1xf32, #tpu.memory_space<vmem>>, vector<1x4x1xf32>
    %23 = vector.shape_cast %22 : vector<1x4x1xf32> to vector<4x1xf32>
    %cst_18 = arith.constant dense<0.000000e+00> : vector<4xf32>
    %24 = vector.multi_reduction <add>, %21, %cst_18 [1] : vector<4x256xf32> to vector<4xf32>
    %25 = vector.shape_cast %24 : vector<4xf32> to vector<4x1xf32>
    %26 = arith.addf %23, %25 : vector<4x1xf32>
    %c0_19 = arith.constant 0 : index
    %c0_20 = arith.constant 0 : index
    %c0_21 = arith.constant 0 : index
    %27 = vector.load %arg10[%c0_19, %c0_20, %c0_21] : memref<1x4x1xf32, #tpu.memory_space<vmem>>, vector<1x4x1xf32>
    %28 = vector.shape_cast %27 : vector<1x4x1xf32> to vector<4x1xf32>
    %29 = vector.shape_cast %26 : vector<4x1xf32> to vector<1x4x1xf32>
    tpu.vector_store %arg10[%c0_19, %c0_20, %c0_21], %29 {strides = array<i32>} : memref<1x4x1xf32, #tpu.memory_space<vmem>>, vector<1x4x1xf32>,
    %c0_22 = arith.constant 0 : index
    %c0_23 = arith.constant 0 : index
    %c0_24 = arith.constant 0 : index
    %30 = vector.load %arg11[%c0_22, %c0_23, %c0_24] : memref<1x4x1xf32, #tpu.memory_space<vmem>>, vector<1x4x1xf32>
    %31 = vector.shape_cast %30 : vector<1x4x1xf32> to vector<4x1xf32>
    %32 = arith.mulf %21, %21 : vector<4x256xf32>
    %cst_25 = arith.constant dense<0.000000e+00> : vector<4xf32>
    %33 = vector.multi_reduction <add>, %32, %cst_25 [1] : vector<4x256xf32> to vector<4xf32>
    %34 = vector.shape_cast %33 : vector<4xf32> to vector<4x1xf32>
    %35 = arith.addf %31, %34 : vector<4x1xf32>
    %c0_26 = arith.constant 0 : index
    %c0_27 = arith.constant 0 : index
    %c0_28 = arith.constant 0 : index
    %36 = vector.load %arg11[%c0_26, %c0_27, %c0_28] : memref<1x4x1xf32, #tpu.memory_space<vmem>>, vector<1x4x1xf32>
    %37 = vector.shape_cast %36 : vector<1x4x1xf32> to vector<4x1xf32>
    %38 = vector.shape_cast %35 : vector<4x1xf32> to vector<1x4x1xf32>
    tpu.vector_store %arg11[%c0_26, %c0_27, %c0_28], %38 {strides = array<i32>} : memref<1x4x1xf32, #tpu.memory_space<vmem>>, vector<1x4x1xf32>,
    return
  }
  func.func @transform_0(%arg0: i32, %arg1: i32) -> (i32, i32, i32) {
    %c0_i32 = arith.constant 0 : i32
    %c0_i32_0 = arith.constant 0 : i32
    %c0_i32_1 = arith.constant 0 : i32
    return %arg0, %c0_i32, %c0_i32_0 : i32, i32, i32
  }
  func.func @transform_1(%arg0: i32, %arg1: i32) -> (i32, i32, i32) {
    %c0_i32 = arith.constant 0 : i32
    %c0_i32_0 = arith.constant 0 : i32
    return %arg0, %c0_i32, %arg1 : i32, i32, i32
  }
  func.func @transform_2(%arg0: i32, %arg1: i32) -> (i32, i32) {
    %c0_i32 = arith.constant 0 : i32
    %c0_i32_0 = arith.constant 0 : i32
    %c0_i32_1 = arith.constant 0 : i32
    return %c0_i32, %c0_i32_0 : i32, i32
  }
  func.func @transform_3(%arg0: i32, %arg1: i32) -> (i32, i32) {
    %c0_i32 = arith.constant 0 : i32
    %c0_i32_0 = arith.constant 0 : i32
    %c0_i32_1 = arith.constant 0 : i32
    return %c0_i32, %c0_i32_0 : i32, i32
  }
  func.func @transform_4(%arg0: i32, %arg1: i32) -> (i32, i32) {
    %c0_i32 = arith.constant 0 : i32
    %c0_i32_0 = arith.constant 0 : i32
    %c0_i32_1 = arith.constant 0 : i32
    return %c0_i32, %c0_i32_0 : i32, i32
  }
  func.func @transform_5(%arg0: i32, %arg1: i32) -> (i32, i32) {
    %c0_i32 = arith.constant 0 : i32
    %c0_i32_0 = arith.constant 0 : i32
    %c0_i32_1 = arith.constant 0 : i32
    return %c0_i32, %c0_i32_0 : i32, i32
  }
  func.func @transform_6(%arg0: i32, %arg1: i32) -> (i32, i32) {
    %c0_i32 = arith.constant 0 : i32
    %c0_i32_0 = arith.constant 0 : i32
    %c0_i32_1 = arith.constant 0 : i32
    return %c0_i32, %c0_i32_0 : i32, i32
  }
  func.func @transform_7(%arg0: i32, %arg1: i32) -> (i32, i32) {
    %c0_i32 = arith.constant 0 : i32
    %c0_i32_0 = arith.constant 0 : i32
    %c0_i32_1 = arith.constant 0 : i32
    return %c0_i32, %c0_i32_0 : i32, i32
  }
  func.func @transform_8(%arg0: i32, %arg1: i32) -> (i32, i32, i32) {
    %c0_i32 = arith.constant 0 : i32
    %c0_i32_0 = arith.constant 0 : i32
    %c0_i32_1 = arith.constant 0 : i32
    return %arg0, %c0_i32, %c0_i32_0 : i32, i32, i32
  }
  func.func @transform_9(%arg0: i32, %arg1: i32) -> (i32, i32, i32) {
    %c0_i32 = arith.constant 0 : i32
    %c0_i32_0 = arith.constant 0 : i32
    %c0_i32_1 = arith.constant 0 : i32
    return %arg0, %c0_i32, %c0_i32_0 : i32, i32, i32
  }
}

module attributes {stable_mosaic.version = 11 : i64} {
  func.func @_pass1_kernel(%arg0: i32, %arg1: i32, %arg2: memref<1x4x256xf32, #tpu.memory_space<vmem>>, %arg3: memref<64x4xbf16, #tpu.memory_space<vmem>>, %arg4: memref<1x64x1xf32, #tpu.memory_space<vmem>>, %arg5: memref<1x64x1xf32, #tpu.memory_space<vmem>>) attributes {dimension_semantics = [#tpu.dimension_semantics<parallel>, #tpu.dimension_semantics<arbitrary>], iteration_bounds = array<i64: 2, 1>, scalar_prefetch = 0 : i64, scratch_operands = 0 : i64, tpu.core_type = #tpu.core_type<tc>, window_params = [{transform_indices = @transform_0, window_bounds = array<i64: 1, 4, 256>}, {pipeline_mode = #tpu.pipeline_mode<synchronous>, transform_indices = @transform_1, window_bounds = array<i64: 64, 4>}, {transform_indices = @transform_2, window_bounds = array<i64: 1, 64, 1>}, {transform_indices = @transform_3, window_bounds = array<i64: 1, 64, 1>}]} {
    %c0_i32 = arith.constant 0 : i32
    %0 = arith.cmpi eq, %arg1, %c0_i32 : i32
    %1 = arith.extui %0 : i1 to i32
    %c0_i32_0 = arith.constant 0 : i32
    %2 = arith.cmpi ne, %1, %c0_i32_0 : i32
    scf.if %2 {
      %cst_19 = arith.constant 0.000000e+00 : f32
      %25 = vector.broadcast %cst_19 : f32 to vector<64x1xf32>
      %c0_20 = arith.constant 0 : index
      %c0_21 = arith.constant 0 : index
      %c0_22 = arith.constant 0 : index
      %26 = vector.load %arg4[%c0_20, %c0_21, %c0_22] : memref<1x64x1xf32, #tpu.memory_space<vmem>>, vector<1x64x1xf32>
      %27 = vector.shape_cast %26 : vector<1x64x1xf32> to vector<64x1xf32>
      %28 = vector.shape_cast %25 : vector<64x1xf32> to vector<1x64x1xf32>
      tpu.vector_store %arg4[%c0_20, %c0_21, %c0_22], %28 {strides = array<i32>} : memref<1x64x1xf32, #tpu.memory_space<vmem>>, vector<1x64x1xf32>,
      %cst_23 = arith.constant 0.000000e+00 : f32
      %29 = vector.broadcast %cst_23 : f32 to vector<64x1xf32>
      %c0_24 = arith.constant 0 : index
      %c0_25 = arith.constant 0 : index
      %c0_26 = arith.constant 0 : index
      %30 = vector.load %arg5[%c0_24, %c0_25, %c0_26] : memref<1x64x1xf32, #tpu.memory_space<vmem>>, vector<1x64x1xf32>
      %31 = vector.shape_cast %30 : vector<1x64x1xf32> to vector<64x1xf32>
      %32 = vector.shape_cast %29 : vector<64x1xf32> to vector<1x64x1xf32>
      tpu.vector_store %arg5[%c0_24, %c0_25, %c0_26], %32 {strides = array<i32>} : memref<1x64x1xf32, #tpu.memory_space<vmem>>, vector<1x64x1xf32>,
    } else {
    }
    %c0 = arith.constant 0 : index
    %c0_1 = arith.constant 0 : index
    %3 = vector.load %arg3[%c0, %c0_1] : memref<64x4xbf16, #tpu.memory_space<vmem>>, vector<64x4xbf16>
    %c0_2 = arith.constant 0 : index
    %c0_3 = arith.constant 0 : index
    %c0_4 = arith.constant 0 : index
    %4 = vector.load %arg2[%c0_2, %c0_3, %c0_4] : memref<1x4x256xf32, #tpu.memory_space<vmem>>, vector<1x4x256xf32>
    %5 = vector.shape_cast %4 : vector<1x4x256xf32> to vector<4x256xf32>
    %6 = arith.truncf %5 : vector<4x256xf32> to vector<4x256xbf16>
    %cst = arith.constant dense<0.000000e+00> : vector<64x256xf32>
    %7 = tpu.matmul %3, %6, %cst {dimension_numbers = #tpu.dot_dimension_numbers<[1], [0], [0], [1], [0, 0, 1, 1], [], []>} : vector<64x4xbf16>, vector<4x256xbf16>, vector<64x256xf32> -> vector<64x256xf32>
    %c0_5 = arith.constant 0 : index
    %c0_6 = arith.constant 0 : index
    %c0_7 = arith.constant 0 : index
    %8 = vector.load %arg4[%c0_5, %c0_6, %c0_7] : memref<1x64x1xf32, #tpu.memory_space<vmem>>, vector<1x64x1xf32>
    %9 = vector.shape_cast %8 : vector<1x64x1xf32> to vector<64x1xf32>
    %cst_8 = arith.constant dense<0.000000e+00> : vector<64xf32>
    %10 = vector.multi_reduction <add>, %7, %cst_8 [1] : vector<64x256xf32> to vector<64xf32>
    %11 = vector.shape_cast %10 : vector<64xf32> to vector<64x1xf32>
    %12 = arith.addf %9, %11 : vector<64x1xf32>
    %c0_9 = arith.constant 0 : index
    %c0_10 = arith.constant 0 : index
    %c0_11 = arith.constant 0 : index
    %13 = vector.load %arg4[%c0_9, %c0_10, %c0_11] : memref<1x64x1xf32, #tpu.memory_space<vmem>>, vector<1x64x1xf32>
    %14 = vector.shape_cast %13 : vector<1x64x1xf32> to vector<64x1xf32>
    %15 = vector.shape_cast %12 : vector<64x1xf32> to vector<1x64x1xf32>
    tpu.vector_store %arg4[%c0_9, %c0_10, %c0_11], %15 {strides = array<i32>} : memref<1x64x1xf32, #tpu.memory_space<vmem>>, vector<1x64x1xf32>,
    %c0_12 = arith.constant 0 : index
    %c0_13 = arith.constant 0 : index
    %c0_14 = arith.constant 0 : index
    %16 = vector.load %arg5[%c0_12, %c0_13, %c0_14] : memref<1x64x1xf32, #tpu.memory_space<vmem>>, vector<1x64x1xf32>
    %17 = vector.shape_cast %16 : vector<1x64x1xf32> to vector<64x1xf32>
    %18 = arith.mulf %7, %7 : vector<64x256xf32>
    %cst_15 = arith.constant dense<0.000000e+00> : vector<64xf32>
    %19 = vector.multi_reduction <add>, %18, %cst_15 [1] : vector<64x256xf32> to vector<64xf32>
    %20 = vector.shape_cast %19 : vector<64xf32> to vector<64x1xf32>
    %21 = arith.addf %17, %20 : vector<64x1xf32>
    %c0_16 = arith.constant 0 : index
    %c0_17 = arith.constant 0 : index
    %c0_18 = arith.constant 0 : index
    %22 = vector.load %arg5[%c0_16, %c0_17, %c0_18] : memref<1x64x1xf32, #tpu.memory_space<vmem>>, vector<1x64x1xf32>
    %23 = vector.shape_cast %22 : vector<1x64x1xf32> to vector<64x1xf32>
    %24 = vector.shape_cast %21 : vector<64x1xf32> to vector<1x64x1xf32>
    tpu.vector_store %arg5[%c0_16, %c0_17, %c0_18], %24 {strides = array<i32>} : memref<1x64x1xf32, #tpu.memory_space<vmem>>, vector<1x64x1xf32>,
    return
  }
  func.func @transform_0(%arg0: i32, %arg1: i32) -> (i32, i32, i32) {
    %c0_i32 = arith.constant 0 : i32
    %c0_i32_0 = arith.constant 0 : i32
    return %arg0, %c0_i32, %arg1 : i32, i32, i32
  }
  func.func @transform_1(%arg0: i32, %arg1: i32) -> (i32, i32) {
    %c0_i32 = arith.constant 0 : i32
    %c0_i32_0 = arith.constant 0 : i32
    %c0_i32_1 = arith.constant 0 : i32
    return %c0_i32, %c0_i32_0 : i32, i32
  }
  func.func @transform_2(%arg0: i32, %arg1: i32) -> (i32, i32, i32) {
    %c0_i32 = arith.constant 0 : i32
    %c0_i32_0 = arith.constant 0 : i32
    %c0_i32_1 = arith.constant 0 : i32
    return %arg0, %c0_i32, %c0_i32_0 : i32, i32, i32
  }
  func.func @transform_3(%arg0: i32, %arg1: i32) -> (i32, i32, i32) {
    %c0_i32 = arith.constant 0 : i32
    %c0_i32_0 = arith.constant 0 : i32
    %c0_i32_1 = arith.constant 0 : i32
    return %arg0, %c0_i32, %c0_i32_0 : i32, i32, i32
  }
}

module attributes {stable_mosaic.version = 11 : i64} {
  func.func @_pass2_kernel(%arg0: i32, %arg1: i32, %arg2: memref<1x4x256xf32, #tpu.memory_space<vmem>>, %arg3: memref<64x4xbf16, #tpu.memory_space<vmem>>, %arg4: memref<64x1xf32, #tpu.memory_space<vmem>>, %arg5: memref<64x1xf32, #tpu.memory_space<vmem>>, %arg6: memref<1x64x1xf32, #tpu.memory_space<vmem>>) attributes {dimension_semantics = [#tpu.dimension_semantics<parallel>, #tpu.dimension_semantics<arbitrary>], iteration_bounds = array<i64: 2, 1>, scalar_prefetch = 0 : i64, scratch_operands = 0 : i64, tpu.core_type = #tpu.core_type<tc>, window_params = [{transform_indices = @transform_0, window_bounds = array<i64: 1, 4, 256>}, {pipeline_mode = #tpu.pipeline_mode<synchronous>, transform_indices = @transform_1, window_bounds = array<i64: 64, 4>}, {pipeline_mode = #tpu.pipeline_mode<synchronous>, transform_indices = @transform_2, window_bounds = array<i64: 64, 1>}, {pipeline_mode = #tpu.pipeline_mode<synchronous>, transform_indices = @transform_3, window_bounds = array<i64: 64, 1>}, {transform_indices = @transform_4, window_bounds = array<i64: 1, 64, 1>}]} {
    %c0_i32 = arith.constant 0 : i32
    %0 = arith.cmpi eq, %arg1, %c0_i32 : i32
    %1 = arith.extui %0 : i1 to i32
    %c0_i32_0 = arith.constant 0 : i32
    %2 = arith.cmpi ne, %1, %c0_i32_0 : i32
    scf.if %2 {
      %cst_17 = arith.constant 0.000000e+00 : f32
      %24 = vector.broadcast %cst_17 : f32 to vector<64x1xf32>
      %c0_18 = arith.constant 0 : index
      %c0_19 = arith.constant 0 : index
      %c0_20 = arith.constant 0 : index
      %25 = vector.load %arg6[%c0_18, %c0_19, %c0_20] : memref<1x64x1xf32, #tpu.memory_space<vmem>>, vector<1x64x1xf32>
      %26 = vector.shape_cast %25 : vector<1x64x1xf32> to vector<64x1xf32>
      %27 = vector.shape_cast %24 : vector<64x1xf32> to vector<1x64x1xf32>
      tpu.vector_store %arg6[%c0_18, %c0_19, %c0_20], %27 {strides = array<i32>} : memref<1x64x1xf32, #tpu.memory_space<vmem>>, vector<1x64x1xf32>,
    } else {
    }
    %c0 = arith.constant 0 : index
    %c0_1 = arith.constant 0 : index
    %3 = vector.load %arg3[%c0, %c0_1] : memref<64x4xbf16, #tpu.memory_space<vmem>>, vector<64x4xbf16>
    %c0_2 = arith.constant 0 : index
    %c0_3 = arith.constant 0 : index
    %c0_4 = arith.constant 0 : index
    %4 = vector.load %arg2[%c0_2, %c0_3, %c0_4] : memref<1x4x256xf32, #tpu.memory_space<vmem>>, vector<1x4x256xf32>
    %5 = vector.shape_cast %4 : vector<1x4x256xf32> to vector<4x256xf32>
    %6 = arith.truncf %5 : vector<4x256xf32> to vector<4x256xbf16>
    %cst = arith.constant dense<0.000000e+00> : vector<64x256xf32>
    %7 = tpu.matmul %3, %6, %cst {dimension_numbers = #tpu.dot_dimension_numbers<[1], [0], [0], [1], [0, 0, 1, 1], [], []>} : vector<64x4xbf16>, vector<4x256xbf16>, vector<64x256xf32> -> vector<64x256xf32>
    %c0_5 = arith.constant 0 : index
    %c0_6 = arith.constant 0 : index
    %8 = vector.load %arg4[%c0_5, %c0_6] : memref<64x1xf32, #tpu.memory_space<vmem>>, vector<64x1xf32>
    %9 = vector.broadcast %8 : vector<64x1xf32> to vector<64x256xf32>
    %10 = arith.mulf %7, %9 : vector<64x256xf32>
    %c0_7 = arith.constant 0 : index
    %c0_8 = arith.constant 0 : index
    %11 = vector.load %arg5[%c0_7, %c0_8] : memref<64x1xf32, #tpu.memory_space<vmem>>, vector<64x1xf32>
    %12 = vector.broadcast %11 : vector<64x1xf32> to vector<64x256xf32>
    %13 = arith.addf %10, %12 : vector<64x256xf32>
    %cst_9 = arith.constant 0.000000e+00 : f32
    %14 = vector.broadcast %cst_9 : f32 to vector<64x256xf32>
    %15 = arith.maximumf %13, %14 : vector<64x256xf32>
    %c0_10 = arith.constant 0 : index
    %c0_11 = arith.constant 0 : index
    %c0_12 = arith.constant 0 : index
    %16 = vector.load %arg6[%c0_10, %c0_11, %c0_12] : memref<1x64x1xf32, #tpu.memory_space<vmem>>, vector<1x64x1xf32>
    %17 = vector.shape_cast %16 : vector<1x64x1xf32> to vector<64x1xf32>
    %cst_13 = arith.constant dense<0.000000e+00> : vector<64xf32>
    %18 = vector.multi_reduction <add>, %15, %cst_13 [1] : vector<64x256xf32> to vector<64xf32>
    %19 = vector.shape_cast %18 : vector<64xf32> to vector<64x1xf32>
    %20 = arith.addf %17, %19 : vector<64x1xf32>
    %c0_14 = arith.constant 0 : index
    %c0_15 = arith.constant 0 : index
    %c0_16 = arith.constant 0 : index
    %21 = vector.load %arg6[%c0_14, %c0_15, %c0_16] : memref<1x64x1xf32, #tpu.memory_space<vmem>>, vector<1x64x1xf32>
    %22 = vector.shape_cast %21 : vector<1x64x1xf32> to vector<64x1xf32>
    %23 = vector.shape_cast %20 : vector<64x1xf32> to vector<1x64x1xf32>
    tpu.vector_store %arg6[%c0_14, %c0_15, %c0_16], %23 {strides = array<i32>} : memref<1x64x1xf32, #tpu.memory_space<vmem>>, vector<1x64x1xf32>,
    return
  }
  func.func @transform_0(%arg0: i32, %arg1: i32) -> (i32, i32, i32) {
    %c0_i32 = arith.constant 0 : i32
    %c0_i32_0 = arith.constant 0 : i32
    return %arg0, %c0_i32, %arg1 : i32, i32, i32
  }
  func.func @transform_1(%arg0: i32, %arg1: i32) -> (i32, i32) {
    %c0_i32 = arith.constant 0 : i32
    %c0_i32_0 = arith.constant 0 : i32
    %c0_i32_1 = arith.constant 0 : i32
    return %c0_i32, %c0_i32_0 : i32, i32
  }
  func.func @transform_2(%arg0: i32, %arg1: i32) -> (i32, i32) {
    %c0_i32 = arith.constant 0 : i32
    %c0_i32_0 = arith.constant 0 : i32
    %c0_i32_1 = arith.constant 0 : i32
    return %c0_i32, %c0_i32_0 : i32, i32
  }
  func.func @transform_3(%arg0: i32, %arg1: i32) -> (i32, i32) {
    %c0_i32 = arith.constant 0 : i32
    %c0_i32_0 = arith.constant 0 : i32
    %c0_i32_1 = arith.constant 0 : i32
    return %c0_i32, %c0_i32_0 : i32, i32
  }
  func.func @transform_4(%arg0: i32, %arg1: i32) -> (i32, i32, i32) {
    %c0_i32 = arith.constant 0 : i32
    %c0_i32_0 = arith.constant 0 : i32
    %c0_i32_1 = arith.constant 0 : i32
    return %arg0, %c0_i32, %c0_i32_0 : i32, i32, i32
  }
}

module attributes {stable_mosaic.version = 11 : i64} {
  func.func @_pass4_kernel(%arg0: i32, %arg1: i32, %arg2: memref<1x64x1xf32, #tpu.memory_space<vmem>>, %arg3: memref<1x4x256xf32, #tpu.memory_space<vmem>>, %arg4: memref<64x4xbf16, #tpu.memory_space<vmem>>, %arg5: memref<64x1xf32, #tpu.memory_space<vmem>>, %arg6: memref<64x1xf32, #tpu.memory_space<vmem>>, %arg7: memref<4x64xf32, #tpu.memory_space<vmem>>, %arg8: memref<64x4xf32, #tpu.memory_space<vmem>>, %arg9: memref<4x64xbf16, #tpu.memory_space<vmem>>, %arg10: memref<4x1xf32, #tpu.memory_space<vmem>>, %arg11: memref<4x1xf32, #tpu.memory_space<vmem>>, %arg12: memref<1x4x256xf32, #tpu.memory_space<vmem>>, %arg13: memref<64x1xf32, #tpu.memory_space<vmem>>) attributes {dimension_semantics = [#tpu.dimension_semantics<parallel>, #tpu.dimension_semantics<arbitrary>], iteration_bounds = array<i64: 2, 1>, scalar_prefetch = 0 : i64, scratch_operands = 1 : i64, tpu.core_type = #tpu.core_type<tc>, window_params = [{transform_indices = @transform_0, window_bounds = array<i64: 1, 64, 1>}, {transform_indices = @transform_1, window_bounds = array<i64: 1, 4, 256>}, {pipeline_mode = #tpu.pipeline_mode<synchronous>, transform_indices = @transform_2, window_bounds = array<i64: 64, 4>}, {pipeline_mode = #tpu.pipeline_mode<synchronous>, transform_indices = @transform_3, window_bounds = array<i64: 64, 1>}, {pipeline_mode = #tpu.pipeline_mode<synchronous>, transform_indices = @transform_4, window_bounds = array<i64: 64, 1>}, {pipeline_mode = #tpu.pipeline_mode<synchronous>, transform_indices = @transform_5, window_bounds = array<i64: 4, 64>}, {pipeline_mode = #tpu.pipeline_mode<synchronous>, transform_indices = @transform_6, window_bounds = array<i64: 64, 4>}, {pipeline_mode = #tpu.pipeline_mode<synchronous>, transform_indices = @transform_7, window_bounds = array<i64: 4, 64>}, {pipeline_mode = #tpu.pipeline_mode<synchronous>, transform_indices = @transform_8, window_bounds = array<i64: 4, 1>}, {pipeline_mode = #tpu.pipeline_mode<synchronous>, transform_indices = @transform_9, window_bounds = array<i64: 4, 1>}, {transform_indices = @transform_10, window_bounds = array<i64: 1, 4, 256>}]} {
    %c0_i32 = arith.constant 0 : i32
    %0 = arith.cmpi eq, %arg1, %c0_i32 : i32
    %1 = arith.extui %0 : i1 to i32
    %c0_i32_0 = arith.constant 0 : i32
    %2 = arith.cmpi ne, %1, %c0_i32_0 : i32
    scf.if %2 {
      %c0_23 = arith.constant 0 : index
      %c0_24 = arith.constant 0 : index
      %c0_25 = arith.constant 0 : index
      %33 = vector.load %arg2[%c0_23, %c0_24, %c0_25] : memref<1x64x1xf32, #tpu.memory_space<vmem>>, vector<1x64x1xf32>
      %34 = vector.shape_cast %33 : vector<1x64x1xf32> to vector<64x1xf32>
      %c0_26 = arith.constant 0 : index
      %c0_27 = arith.constant 0 : index
      %35 = vector.load %arg7[%c0_26, %c0_27] : memref<4x64xf32, #tpu.memory_space<vmem>>, vector<4x64xf32>
      %cst_28 = arith.constant dense<0.000000e+00> : vector<4x1xf32>
      %36 = tpu.matmul %35, %34, %cst_28 {dimension_numbers = #tpu.dot_dimension_numbers<[1], [0], [0], [1], [0, 0, 1, 1], [], []>} : vector<4x64xf32>, vector<64x1xf32>, vector<4x1xf32> -> vector<4x1xf32>
      %cst_29 = arith.constant 0.000000e+00 : f32
      %37 = vector.broadcast %cst_29 : f32 to vector<4x1xf32>
      %38 = arith.maximumf %36, %37 : vector<4x1xf32>
      %c0_30 = arith.constant 0 : index
      %c0_31 = arith.constant 0 : index
      %39 = vector.load %arg8[%c0_30, %c0_31] : memref<64x4xf32, #tpu.memory_space<vmem>>, vector<64x4xf32>
      %cst_32 = arith.constant dense<0.000000e+00> : vector<64x1xf32>
      %40 = tpu.matmul %39, %38, %cst_32 {dimension_numbers = #tpu.dot_dimension_numbers<[1], [0], [0], [1], [0, 0, 1, 1], [], []>} : vector<64x4xf32>, vector<4x1xf32>, vector<64x1xf32> -> vector<64x1xf32>
      %cst_33 = arith.constant 0.000000e+00 : f32
      %41 = vector.broadcast %cst_33 : f32 to vector<64x1xf32>
      %42 = arith.subf %41, %40 : vector<64x1xf32>
      %43 = math.exp %42 : vector<64x1xf32>
      %cst_34 = arith.constant 1.000000e+00 : f32
      %44 = vector.broadcast %cst_34 : f32 to vector<64x1xf32>
      %45 = arith.addf %44, %43 : vector<64x1xf32>
      %cst_35 = arith.constant 1.000000e+00 : f32
      %46 = vector.broadcast %cst_35 : f32 to vector<64x1xf32>
      %47 = arith.divf %46, %45 : vector<64x1xf32>
      %c0_36 = arith.constant 0 : index
      %c0_37 = arith.constant 0 : index
      %48 = vector.load %arg13[%c0_36, %c0_37] : memref<64x1xf32, #tpu.memory_space<vmem>>, vector<64x1xf32>
      tpu.vector_store %arg13[%c0_36, %c0_37], %47 {strides = array<i32>} : memref<64x1xf32, #tpu.memory_space<vmem>>, vector<64x1xf32>,
    } else {
    }
    %c0 = arith.constant 0 : index
    %c0_1 = arith.constant 0 : index
    %3 = vector.load %arg4[%c0, %c0_1] : memref<64x4xbf16, #tpu.memory_space<vmem>>, vector<64x4xbf16>
    %c0_2 = arith.constant 0 : index
    %c0_3 = arith.constant 0 : index
    %c0_4 = arith.constant 0 : index
    %4 = vector.load %arg3[%c0_2, %c0_3, %c0_4] : memref<1x4x256xf32, #tpu.memory_space<vmem>>, vector<1x4x256xf32>
    %5 = vector.shape_cast %4 : vector<1x4x256xf32> to vector<4x256xf32>
    %6 = arith.truncf %5 : vector<4x256xf32> to vector<4x256xbf16>
    %cst = arith.constant dense<0.000000e+00> : vector<64x256xf32>
    %7 = tpu.matmul %3, %6, %cst {dimension_numbers = #tpu.dot_dimension_numbers<[1], [0], [0], [1], [0, 0, 1, 1], [], []>} : vector<64x4xbf16>, vector<4x256xbf16>, vector<64x256xf32> -> vector<64x256xf32>
    %c0_5 = arith.constant 0 : index
    %c0_6 = arith.constant 0 : index
    %8 = vector.load %arg5[%c0_5, %c0_6] : memref<64x1xf32, #tpu.memory_space<vmem>>, vector<64x1xf32>
    %9 = vector.broadcast %8 : vector<64x1xf32> to vector<64x256xf32>
    %10 = arith.mulf %7, %9 : vector<64x256xf32>
    %c0_7 = arith.constant 0 : index
    %c0_8 = arith.constant 0 : index
    %11 = vector.load %arg6[%c0_7, %c0_8] : memref<64x1xf32, #tpu.memory_space<vmem>>, vector<64x1xf32>
    %12 = vector.broadcast %11 : vector<64x1xf32> to vector<64x256xf32>
    %13 = arith.addf %10, %12 : vector<64x256xf32>
    %cst_9 = arith.constant 0.000000e+00 : f32
    %14 = vector.broadcast %cst_9 : f32 to vector<64x256xf32>
    %15 = arith.maximumf %13, %14 : vector<64x256xf32>
    %c0_10 = arith.constant 0 : index
    %c0_11 = arith.constant 0 : index
    %16 = vector.load %arg13[%c0_10, %c0_11] : memref<64x1xf32, #tpu.memory_space<vmem>>, vector<64x1xf32>
    %17 = vector.broadcast %16 : vector<64x1xf32> to vector<64x256xf32>
    %18 = arith.mulf %15, %17 : vector<64x256xf32>
    %19 = arith.truncf %18 : vector<64x256xf32> to vector<64x256xbf16>
    %c0_12 = arith.constant 0 : index
    %c0_13 = arith.constant 0 : index
    %20 = vector.load %arg9[%c0_12, %c0_13] : memref<4x64xbf16, #tpu.memory_space<vmem>>, vector<4x64xbf16>
    %cst_14 = arith.constant dense<0.000000e+00> : vector<4x256xf32>
    %21 = tpu.matmul %20, %19, %cst_14 {dimension_numbers = #tpu.dot_dimension_numbers<[1], [0], [0], [1], [0, 0, 1, 1], [], []>} : vector<4x64xbf16>, vector<64x256xbf16>, vector<4x256xf32> -> vector<4x256xf32>
    %c0_15 = arith.constant 0 : index
    %c0_16 = arith.constant 0 : index
    %22 = vector.load %arg10[%c0_15, %c0_16] : memref<4x1xf32, #tpu.memory_space<vmem>>, vector<4x1xf32>
    %23 = vector.broadcast %22 : vector<4x1xf32> to vector<4x256xf32>
    %24 = arith.mulf %21, %23 : vector<4x256xf32>
    %c0_17 = arith.constant 0 : index
    %c0_18 = arith.constant 0 : index
    %25 = vector.load %arg11[%c0_17, %c0_18] : memref<4x1xf32, #tpu.memory_space<vmem>>, vector<4x1xf32>
    %26 = vector.broadcast %25 : vector<4x1xf32> to vector<4x256xf32>
    %27 = arith.addf %24, %26 : vector<4x256xf32>
    %cst_19 = arith.constant 0.000000e+00 : f32
    %28 = vector.broadcast %cst_19 : f32 to vector<4x256xf32>
    %29 = arith.maximumf %27, %28 : vector<4x256xf32>
    %c0_20 = arith.constant 0 : index
    %c0_21 = arith.constant 0 : index
    %c0_22 = arith.constant 0 : index
    %30 = vector.load %arg12[%c0_20, %c0_21, %c0_22] : memref<1x4x256xf32, #tpu.memory_space<vmem>>, vector<1x4x256xf32>
    %31 = vector.shape_cast %30 : vector<1x4x256xf32> to vector<4x256xf32>
    %32 = vector.shape_cast %29 : vector<4x256xf32> to vector<1x4x256xf32>
    tpu.vector_store %arg12[%c0_20, %c0_21, %c0_22], %32 {strides = array<i32>} : memref<1x4x256xf32, #tpu.memory_space<vmem>>, vector<1x4x256xf32>,
    return
  }
  func.func @transform_0(%arg0: i32, %arg1: i32) -> (i32, i32, i32) {
    %c0_i32 = arith.constant 0 : i32
    %c0_i32_0 = arith.constant 0 : i32
    %c0_i32_1 = arith.constant 0 : i32
    return %arg0, %c0_i32, %c0_i32_0 : i32, i32, i32
  }
  func.func @transform_1(%arg0: i32, %arg1: i32) -> (i32, i32, i32) {
    %c0_i32 = arith.constant 0 : i32
    %c0_i32_0 = arith.constant 0 : i32
    return %arg0, %c0_i32, %arg1 : i32, i32, i32
  }
  func.func @transform_2(%arg0: i32, %arg1: i32) -> (i32, i32) {
    %c0_i32 = arith.constant 0 : i32
    %c0_i32_0 = arith.constant 0 : i32
    %c0_i32_1 = arith.constant 0 : i32
    return %c0_i32, %c0_i32_0 : i32, i32
  }
  func.func @transform_3(%arg0: i32, %arg1: i32) -> (i32, i32) {
    %c0_i32 = arith.constant 0 : i32
    %c0_i32_0 = arith.constant 0 : i32
    %c0_i32_1 = arith.constant 0 : i32
    return %c0_i32, %c0_i32_0 : i32, i32
  }
  func.func @transform_4(%arg0: i32, %arg1: i32) -> (i32, i32) {
    %c0_i32 = arith.constant 0 : i32
    %c0_i32_0 = arith.constant 0 : i32
    %c0_i32_1 = arith.constant 0 : i32
    return %c0_i32, %c0_i32_0 : i32, i32
  }
  func.func @transform_5(%arg0: i32, %arg1: i32) -> (i32, i32) {
    %c0_i32 = arith.constant 0 : i32
    %c0_i32_0 = arith.constant 0 : i32
    %c0_i32_1 = arith.constant 0 : i32
    return %c0_i32, %c0_i32_0 : i32, i32
  }
  func.func @transform_6(%arg0: i32, %arg1: i32) -> (i32, i32) {
    %c0_i32 = arith.constant 0 : i32
    %c0_i32_0 = arith.constant 0 : i32
    %c0_i32_1 = arith.constant 0 : i32
    return %c0_i32, %c0_i32_0 : i32, i32
  }
  func.func @transform_7(%arg0: i32, %arg1: i32) -> (i32, i32) {
    %c0_i32 = arith.constant 0 : i32
    %c0_i32_0 = arith.constant 0 : i32
    %c0_i32_1 = arith.constant 0 : i32
    return %c0_i32, %c0_i32_0 : i32, i32
  }
  func.func @transform_8(%arg0: i32, %arg1: i32) -> (i32, i32) {
    %c0_i32 = arith.constant 0 : i32
    %c0_i32_0 = arith.constant 0 : i32
    %c0_i32_1 = arith.constant 0 : i32
    return %c0_i32, %c0_i32_0 : i32, i32
  }
  func.func @transform_9(%arg0: i32, %arg1: i32) -> (i32, i32) {
    %c0_i32 = arith.constant 0 : i32
    %c0_i32_0 = arith.constant 0 : i32
    %c0_i32_1 = arith.constant 0 : i32
    return %c0_i32, %c0_i32_0 : i32, i32
  }
  func.func @transform_10(%arg0: i32, %arg1: i32) -> (i32, i32, i32) {
    %c0_i32 = arith.constant 0 : i32
    %c0_i32_0 = arith.constant 0 : i32
    return %arg0, %c0_i32, %arg1 : i32, i32, i32
  }
}

</mosaic_0001>

<bundles_post_ra>
// kernel: squeeze_excitation.4
= control target key start
LH: loop header
LB: loop body
LE: loop exit
PB: predicated region body
PF: predicated region fallthrough
CT: control target
= control target key end

     0   :  { %s680_s12 = smov 0   ;;  %s682_s13 = smov 0   ;;  %s816_s0 = inlined_call_operand.vmem [shape: f32[2,4,256], index: 0, kind: input, shape index: {}]   ;;  %s817_s1 = inlined_call_operand.vmem [shape: bf16[64,4], index: 1, kind: input, shape index: {}]   ;;  %s818_s2 = inlined_call_operand.vmem [shape: f32[2,64,1], index: 2, kind: output, shape index: {0}]   ;;  %s819_s3 = inlined_call_operand.vmem [shape: f32[2,64,1], index: 3, kind: output, shape index: {1}]  }
   0x1   :  { %s684_s14 = smov 0  }
   0x2 LB: > { %s26_s15 = sadd.s32 1, %s653_s13  ;;  %p568_p0 = scmp.ge.s32.totalorder %s657_s14, 1  ;;  %s657_s14 = sphi %s684_s14, %s14_s14   ;;  %s653_s13 = sphi %s682_s13, %s821_s13   ;;  %s649_s12 = sphi %s680_s12, %s820_s12  }
   0x3   : > { %p28_p1 = scmp.ge.s32.totalorder %s26_s15, 2  ;;  %p159_p2 = scmp.lt.s32.totalorder %s657_s14, 3 }
   0x5   : > { %s823_s15 = smov (%p28_p1, %s26_s15), 0  ;;  %p160_p3 = pnand %p568_p0, %p159_p2 }
   0x6   : > { %p193_p4 = scmp.lt.s32.totalorder (!%p160_p3), %s649_s12, 1 }
   0x7   : > { %163 = sbr.rel (%p160_p3) target bundleno = 325 (0x145), region = 28 }
   0xc   : > { %s825_s12 = smov (!%p193_p4, %s649_s12), 1  ;;  %vm284_vm0 = vcmask 1041408   ;;  %v604_v7 = vld [vmem:[%s817_s1] sm:$0xff]  ;;  %vm271_vm1 = vcmask 31744   ;;  %v606_v8 = vld [vmem:[%s817_s1 + $0x10] sm:$0xff]  ;;  %v605_v9 = vld [vmem:[%s817_s1 + $0x8] sm:$0xff] }
   0xd   : > { %s601_s16 = sshll.u32 %s825_s12, 3  ;;  %v607_v10 = vld [vmem:[%s817_s1 + $0x18] sm:$0xff]  ;;  %s602_s28 = sshll.u32 %s825_s12, 6  ;;  %vm217_vm2 = vcmask 7168   ;;  %v659_v33 = vmov 0.0  }
   0xe   : > { %s200_s19 = scalar_lea.vmem %s816_s0, %s601_s16  ;;  %s720_s4 = scalar_lea.vmem %s818_s2, %s602_s28 }
   0xf   : > { %v242_v0 = vld [vmem:[%s200_s19] sm:$0xff]  ;;  %218 = vst.msk [vmem:[%s720_s4] sm:$0xff] %vm217_vm2, %v659_v33  ;;  %s735_s7 = scalar_lea.vmem %s819_s3, %s602_s28 }
  0x10   : > { %244 = vst [vmem:[#allocation1] ss:$2 sm:$0xff] %v242_v0 }
  0x11   : > { %219 = vst.msk [vmem:[%s720_s4 + $0x8] sm:$0xff] %vm217_vm2, %v659_v33 }
  0x12   : > { %220 = vst.msk [vmem:[%s720_s4 + $0x10] sm:$0xff] %vm217_vm2, %v659_v33 }
  0x13   : > { %221 = vst.msk [vmem:[%s720_s4 + $0x18] sm:$0xff] %vm217_vm2, %v659_v33 }
  0x14   : > { %222 = vst.msk [vmem:[%s720_s4 + $0x20] sm:$0xff] %vm217_vm2, %v659_v33 }
  0x15   : > { %223 = vst.msk [vmem:[%s720_s4 + $0x28] sm:$0xff] %vm217_vm2, %v659_v33 }
  0x16   : > { %224 = vst.msk [vmem:[%s720_s4 + $0x30] sm:$0xff] %vm217_vm2, %v659_v33  ;;  %v349_v60 = vld [vmem:[%s720_s4] sm:$0xff] }
  0x17   : > { %v245_v1 = vld.sshfl [vmem:[#allocation1] sm:$0xff pattern:$0x75316420]  ;;  %v246_v2 = vld.sshfl [vmem:[#allocation1 + $0x8] sm:$0xff pattern:$0x75316420] }
  0x18   : > { %v249_v3 = vpack.c.bf16 %v245_v1, %v245_v1  ;;  %v250_v4 = vpack.c.bf16 %v246_v2, %v246_v2  ;;  %225 = vst.msk [vmem:[%s720_s4 + $0x38] sm:$0xff] %vm217_vm2, %v659_v33  ;;  %v350_v2 = vld [vmem:[%s720_s4 + $0x8] sm:$0xff] }
  0x19   : > { %226 = vst.msk [vmem:[%s735_s7] sm:$0xff] %vm217_vm2, %v659_v33 }
  0x1a   : > { %v286_v5 = vsel %vm284_vm0, %v249_v3, 0  ;;  %v289_v6 = vsel %vm284_vm0, %v250_v4, 0  ;;  %227 = vst.msk [vmem:[%s735_s7 + $0x8] sm:$0xff] %vm217_vm2, %v659_v33 }
  0x1b   : > { %298 = vmatpush.bf16.msra.mxu0 %v286_v5  ;;  %327 = vmatpush.bf16.msra.mxu1 %v289_v6  ;;  %228 = vst.msk [vmem:[%s735_s7 + $0x10] sm:$0xff] %vm217_vm2, %v659_v33  ;;  %v353_v4 = vld [vmem:[%s720_s4 + $0x20] sm:$0xff] }
  0x1c   : > { %608 = vmatpush.bf16.msra.mxu2 %v286_v5  ;;  %609 = vmatpush.bf16.msra.mxu3 %v289_v6  ;;  %229 = vst.msk [vmem:[%s735_s7 + $0x18] sm:$0xff] %vm217_vm2, %v659_v33 }
  0x1d   : > { %230 = vst.msk [vmem:[%s735_s7 + $0x20] sm:$0xff] %vm217_vm2, %v659_v33 }
  0x1e   : > { %591 = vmatmul.msk.bf16.vlgmr.msra.gmra.mxu0 %vm271_vm1, %v604_v7  ;;  %595 = vmatmul.msk.bf16.vlgmr.msra.gmra.mxu1 %vm271_vm1, %v604_v7  ;;  %231 = vst.msk [vmem:[%s735_s7 + $0x28] sm:$0xff] %vm217_vm2, %v659_v33 }
  0x1f   : > { %593 = vmatmul.msk.bf16.vlgmr.msra.gmra.mxu2 %vm271_vm1, %v606_v8  ;;  %597 = vmatmul.msk.bf16.vlgmr.msra.gmra.mxu3 %vm271_vm1, %v606_v8  ;;  %232 = vst.msk [vmem:[%s735_s7 + $0x30] sm:$0xff] %vm217_vm2, %v659_v33 }
  0x20   : > { %233 = vst.msk [vmem:[%s735_s7 + $0x38] sm:$0xff] %vm217_vm2, %v659_v33  ;;  %v398_v62 = vld [vmem:[%s735_s7] sm:$0xff] }
  0x24   : > { %v402_v8 = vld [vmem:[%s735_s7 + $0x20] sm:$0xff] }
  0x2e   : > { %592 = vmatmul.msk.bf16.gmra.mxu0 %vm271_vm1, %v605_v9  ;;  %596 = vmatmul.msk.bf16.gmra.mxu1 %vm271_vm1, %v605_v9  ;;  %v351_v9 = vld [vmem:[%s720_s4 + $0x10] sm:$0xff] }
  0x2f   : > { %594 = vmatmul.msk.bf16.gmra.mxu2 %vm271_vm1, %v607_v10  ;;  %598 = vmatmul.msk.bf16.gmra.mxu3 %vm271_vm1, %v607_v10 }
  0x9b   : > { %v300_v11 = vpop.f32.mrf.mxu0  ;;  %v329_v12 = vpop.f32.mrf.mxu1 }
  0x9c   : > { %v406_v13 = vmul.f32 %v300_v11, %v300_v11  ;;  %v407_v14 = vmul.f32 %v329_v12, %v329_v12  ;;  %v357_v15 = vadd.f32 %v329_v12, %v300_v11  ;;  %v354_v12 = vld [vmem:[%s720_s4 + $0x28] sm:$0xff] }
  0x9e   : > { %358 = vadd.xlane.f32.xlu0 %v357_v15  ;;  %v422_v16 = vadd.f32 %v407_v14, %v406_v13 }
  0xa0   : > { %423 = vadd.xlane.f32.xlu2 %v422_v16 }
  0xa2   : > { %v310_v17 = vpop.f32.mrf.mxu2  ;;  %v339_v18 = vpop.f32.mrf.mxu3 }
  0xa3   : > { %v302_v19 = vpop.f32.mrf.mxu0  ;;  %v331_v20 = vpop.f32.mrf.mxu1  ;;  %v369_v22 = vadd.f32 %v339_v18, %v310_v17  ;;  %v414_v23 = vmul.f32 %v310_v17, %v310_v17  ;;  %v415_v24 = vmul.f32 %v339_v18, %v339_v18  ;;  %v399_v17 = vld [vmem:[%s735_s7 + $0x8] sm:$0xff]  ;;  %v400_v18 = vld [vmem:[%s735_s7 + $0x10] sm:$0xff] }
  0xa4   : > { %v360_v21 = vadd.f32 %v331_v20, %v302_v19  ;;  %v408_v32 = vmul.f32 %v302_v19, %v302_v19  ;;  %v409_v34 = vmul.f32 %v331_v20, %v331_v20 }
  0xa5   : > { %v434_v27 = vadd.f32 %v415_v24, %v414_v23 }
  0xa6   : > { %361 = vadd.xlane.f32.xlu0 %v360_v21  ;;  %v425_v43 = vadd.f32 %v409_v34, %v408_v32  ;;  %v401_v21 = vld [vmem:[%s735_s7 + $0x18] sm:$0xff] }
  0xa8   : > { %370 = vadd.xlane.f32.xlu2 %v369_v22 }
  0xaa   : > { %v312_v25 = vpop.f32.mrf.mxu2  ;;  %v341_v26 = vpop.f32.mrf.mxu3 }
  0xab   : > { %v305_v28 = vpop.f32.mrf.mxu0  ;;  %v334_v29 = vpop.f32.mrf.mxu1  ;;  %v372_v31 = vadd.f32 %v341_v26, %v312_v25  ;;  %v416_v57 = vmul.f32 %v312_v25, %v312_v25  ;;  %v417_v58 = vmul.f32 %v341_v26, %v341_v26  ;;  %v355_v26 = vld [vmem:[%s720_s4 + $0x30] sm:$0xff] }
  0xac   : > { %v363_v30 = vadd.f32 %v334_v29, %v305_v28  ;;  %v410_v35 = vmul.f32 %v305_v28, %v305_v28  ;;  %v411_v36 = vmul.f32 %v334_v29, %v334_v29 }
  0xad   : > { %v437_v59 = vadd.f32 %v417_v58, %v416_v57 }
  0xae   : > { %435 = vadd.xlane.f32.xlu0 %v434_v27  ;;  %364 = vadd.xlane.f32.xlu1 %v363_v30  ;;  %v428_v44 = vadd.f32 %v411_v36, %v410_v35  ;;  %v352_v27 = vld [vmem:[%s720_s4 + $0x18] sm:$0xff]  ;;  %v404_v30 = vld [vmem:[%s735_s7 + $0x30] sm:$0xff] }
  0xaf   : > { %v405_v35 = vld [vmem:[%s735_s7 + $0x38] sm:$0xff] }
  0xb0   : > { %373 = vadd.xlane.f32.xlu2 %v372_v31  ;;  %v356_v36 = vld [vmem:[%s720_s4 + $0x38] sm:$0xff] }
  0xb2   : > { %v315_v37 = vpop.f32.mrf.mxu2  ;;  %v344_v38 = vpop.f32.mrf.mxu3 }
  0xb3   : > { %v307_v39 = vpop.f32.mrf.mxu0  ;;  %v336_v40 = vpop.f32.mrf.mxu1  ;;  %v418_v46 = vmul.f32 %v315_v37, %v315_v37  ;;  %v419_v47 = vmul.f32 %v344_v38, %v344_v38  ;;  %v375_v48 = vadd.f32 %v344_v38, %v315_v37 }
  0xb4   : > { %v412_v41 = vmul.f32 %v307_v39, %v307_v39  ;;  %v413_v42 = vmul.f32 %v336_v40, %v336_v40  ;;  %v366_v49 = vadd.f32 %v336_v40, %v307_v39 }
  0xb5   : > { %v440_v50 = vadd.f32 %v419_v47, %v418_v46 }
  0xb6   : > { %426 = vadd.xlane.f32.xlu0 %v425_v43  ;;  %429 = vadd.xlane.f32.xlu1 %v428_v44  ;;  %v431_v45 = vadd.f32 %v413_v42, %v412_v41  ;;  %v403_v41 = vld [vmem:[%s735_s7 + $0x28] sm:$0xff] }
  0xb8   : > { %432 = vadd.xlane.f32.xlu2 %v431_v45 }
  0xba   : > { %v317_v51 = vpop.f32.mrf.mxu2  ;;  %v346_v52 = vpop.f32.mrf.mxu3 }
  0xbb   : > { %v420_v53 = vmul.f32 %v317_v51, %v317_v51  ;;  %v421_v54 = vmul.f32 %v346_v52, %v346_v52  ;;  %v378_v55 = vadd.f32 %v346_v52, %v317_v51 }
  0xbd   : > { %v443_v56 = vadd.f32 %v421_v54, %v420_v53 }
  0xbe   : > { %376 = vadd.xlane.f32.xlu0 %v375_v48  ;;  %367 = vadd.xlane.f32.xlu1 %v366_v49 }
  0xc0   : > { %441 = vadd.xlane.f32.xlu2 %v440_v50 }
  0xc6   : > { %444 = vadd.xlane.f32.xlu0 %v443_v56  ;;  %379 = vadd.xlane.f32.xlu1 %v378_v55 }
  0xce   : > { %438 = vadd.xlane.f32.xlu1 %v437_v59 }
 0x111   : > { %v359_v61 = vpop.xlane.xlu0 %358 }
 0x112   : > { %v381_v63 = vadd.f32 %v359_v61, %v349_v60 }
 0x113   : > { %v424_v0 = vpop.xlane.xlu2 %423 }
 0x114   : > { %390 = vst.msk [vmem:[%s720_s4] sm:$0xff] %vm217_vm2, %v381_v63  ;;  %v446_v1 = vadd.f32 %v424_v0, %v398_v62 }
 0x116   : > { %454 = vst.msk [vmem:[%s735_s7] sm:$0xff] %vm217_vm2, %v446_v1 }
 0x119   : > { %v362_v3 = vpop.xlane.xlu0 %361 }
 0x11a   : > { %v382_v5 = vadd.f32 %v362_v3, %v350_v2 }
 0x11b   : > { %v371_v6 = vpop.xlane.xlu2 %370 }
 0x11c   : > { %391 = vst.msk [vmem:[%s720_s4 + $0x8] sm:$0xff] %vm217_vm2, %v382_v5  ;;  %v385_v7 = vadd.f32 %v371_v6, %v353_v4 }
 0x11e   : > { %394 = vst.msk [vmem:[%s720_s4 + $0x20] sm:$0xff] %vm217_vm2, %v385_v7 }
 0x121   : > { %v436_v10 = vpop.xlane.xlu0 %435  ;;  %v365_v11 = vpop.xlane.xlu1 %364 }
 0x122   : > { %v450_v13 = vadd.f32 %v436_v10, %v402_v8  ;;  %v383_v14 = vadd.f32 %v365_v11, %v351_v9 }
 0x123   : > { %v374_v15 = vpop.xlane.xlu2 %373 }
 0x124   : > { %458 = vst.msk [vmem:[%s735_s7 + $0x20] sm:$0xff] %vm217_vm2, %v450_v13  ;;  %v386_v16 = vadd.f32 %v374_v15, %v354_v12 }
 0x125   : > { %392 = vst.msk [vmem:[%s720_s4 + $0x10] sm:$0xff] %vm217_vm2, %v383_v14 }
 0x126   : > { %395 = vst.msk [vmem:[%s720_s4 + $0x28] sm:$0xff] %vm217_vm2, %v386_v16 }
 0x129   : > { %v427_v19 = vpop.xlane.xlu0 %426  ;;  %v430_v20 = vpop.xlane.xlu1 %429 }
 0x12a   : > { %v447_v22 = vadd.f32 %v427_v19, %v399_v17  ;;  %v448_v23 = vadd.f32 %v430_v20, %v400_v18 }
 0x12b   : > { %v433_v24 = vpop.xlane.xlu2 %432 }
 0x12c   : > { %455 = vst.msk [vmem:[%s735_s7 + $0x8] sm:$0xff] %vm217_vm2, %v447_v22  ;;  %v449_v25 = vadd.f32 %v433_v24, %v401_v21 }
 0x12d   : > { %456 = vst.msk [vmem:[%s735_s7 + $0x10] sm:$0xff] %vm217_vm2, %v448_v23 }
 0x12e   : > { %457 = vst.msk [vmem:[%s735_s7 + $0x18] sm:$0xff] %vm217_vm2, %v449_v25 }
 0x131   : > { %v377_v28 = vpop.xlane.xlu0 %376  ;;  %v368_v29 = vpop.xlane.xlu1 %367 }
 0x132   : > { %v387_v31 = vadd.f32 %v377_v28, %v355_v26  ;;  %v384_v32 = vadd.f32 %v368_v29, %v352_v27 }
 0x133   : > { %v442_v33 = vpop.xlane.xlu2 %441 }
 0x134   : > { %396 = vst.msk [vmem:[%s720_s4 + $0x30] sm:$0xff] %vm217_vm2, %v387_v31  ;;  %v452_v34 = vadd.f32 %v442_v33, %v404_v30 }
 0x135   : > { %393 = vst.msk [vmem:[%s720_s4 + $0x18] sm:$0xff] %vm217_vm2, %v384_v32 }
 0x136   : > { %460 = vst.msk [vmem:[%s735_s7 + $0x30] sm:$0xff] %vm217_vm2, %v452_v34 }
 0x139   : > { %v445_v37 = vpop.xlane.xlu0 %444  ;;  %v380_v38 = vpop.xlane.xlu1 %379 }
 0x13a   : > { %v453_v39 = vadd.f32 %v445_v37, %v405_v35  ;;  %v388_v40 = vadd.f32 %v380_v38, %v356_v36 }
 0x13c   : > { %461 = vst.msk [vmem:[%s735_s7 + $0x38] sm:$0xff] %vm217_vm2, %v453_v39 }
 0x13d   : > { %397 = vst.msk [vmem:[%s720_s4 + $0x38] sm:$0xff] %vm217_vm2, %v388_v40 }
 0x141   : > { %v439_v42 = vpop.xlane.xlu1 %438 }
 0x142   : > { %v451_v43 = vadd.f32 %v439_v42, %v403_v41 }
 0x144   : > { %459 = vst.msk [vmem:[%s735_s7 + $0x28] sm:$0xff] %vm217_vm2, %v451_v43 }
 0x145 PF: > { %s14_s14 = sadd.s32 1, %s657_s14   ;;  %s820_s12 = smov %s653_s13 }
 0x146   : > { %p11_p5 = scmp.ge.s32.totalorder %s14_s14, 4   ;;  %s821_s13 = smov %s823_s15 }
 0x148   :  { %13 = sbr.rel (!%p11_p5) target bundleno = 2 (0x2), region = 74 }

// kernel: squeeze_excitation.5
= control target key start
LH: loop header
LB: loop body
LE: loop exit
PB: predicated region body
PF: predicated region fallthrough
CT: control target
= control target key end

     0   :  { %s740_s15 = smov 0   ;;  %s742_s16 = smov 0   ;;  %s903_s0 = inlined_call_operand.vmem [shape: f32[2,4,256], index: 0, kind: input, shape index: {}]   ;;  %s904_s1 = inlined_call_operand.vmem [shape: bf16[64,4], index: 1, kind: input, shape index: {}]   ;;  %s905_s2 = inlined_call_operand.vmem [shape: f32[64,1], index: 2, kind: input, shape index: {}]   ;;  %s906_s3 = inlined_call_operand.vmem [shape: f32[64,1], index: 3, kind: input, shape index: {}]   ;;  %s907_s4 = inlined_call_operand.vmem [shape: f32[2,64,1], index: 4, kind: output, shape index: {}]  }
   0x1   :  { %s744_s17 = smov 0  }
   0x2 LB: > { %s26_s18 = sadd.s32 1, %s707_s16  ;;  %p621_p0 = scmp.ge.s32.totalorder %s711_s17, 1  ;;  %s711_s17 = sphi %s744_s17, %s14_s17   ;;  %s707_s16 = sphi %s742_s16, %s909_s16   ;;  %s703_s15 = sphi %s740_s15, %s908_s15  }
   0x3   : > { %p28_p1 = scmp.ge.s32.totalorder %s26_s18, 2  ;;  %p181_p2 = scmp.lt.s32.totalorder %s711_s17, 3 }
   0x5   : > { %s911_s18 = smov (%p28_p1, %s26_s18), 0  ;;  %p182_p3 = pnand %p621_p0, %p181_p2 }
   0x6   : > { %p212_p4 = scmp.lt.s32.totalorder (!%p182_p3), %s703_s15, 1 }
   0x7   : > { %185 = sbr.rel (%p182_p3) target bundleno = 317 (0x13d), region = 36 }
   0xc   : > { %v357_v0 = vld [vmem:[%s905_s2 + $0x10] sm:$0xff]  ;;  %v355_v1 = vld [vmem:[%s905_s2] sm:$0xff]  ;;  %v713_v2 = vmov 0   ;;  %s913_s15 = smov (!%p212_p4, %s703_s15), 1  ;;  %v358_v5 = vld [vmem:[%s905_s2 + $0x18] sm:$0xff]  ;;  %vm290_vm0 = vcmask 1041408  }
   0xd   : > { %687 = vset.pattern.permute.xlu1 %v713_v2  ;;  %686 = vset.pattern.permute.xlu0 %v713_v2  ;;  %v359_v3 = vld [vmem:[%s905_s2 + $0x20] sm:$0xff]  ;;  %s652_s25 = sshll.u32 %s913_s15, 3  ;;  %v356_v6 = vld [vmem:[%s905_s2 + $0x8] sm:$0xff]  ;;  %v362_v10 = vld [vmem:[%s905_s2 + $0x38] sm:$0xff]  ;;  %vm277_vm1 = vcmask 31744   ;;  %s653_s19 = sshll.u32 %s913_s15, 6 }
   0xe   : > { %375 = vperm.xlu1 %687, %v357_v0   ;;  %365 = vperm.xlu0 %686, %v355_v1   ;;  %s219_s28 = scalar_lea.vmem %s903_s0, %s652_s25  ;;  %v360_v7 = vld [vmem:[%s905_s2 + $0x28] sm:$0xff]  ;;  %v361_v11 = vld [vmem:[%s905_s2 + $0x30] sm:$0xff]  ;;  %v654_v16 = vld [vmem:[%s904_s1] sm:$0xff]  ;;  %s844_s22 = scalar_lea.vmem %s907_s4, %s653_s19  ;;  %vm231_vm2 = vcmask 7168   ;;  %v714_v59 = vmov 0.0  }
   0xf   : > { %688 = vset.pattern.permute.xlu2 %v713_v2  ;;  %v248_v4 = vld [vmem:[%s219_s28] sm:$0xff]  ;;  %v656_v17 = vld [vmem:[%s904_s1 + $0x10] sm:$0xff]  ;;  %v420_v20 = vld [vmem:[%s906_s3 + $0x8] sm:$0xff]  ;;  %232 = vst.msk [vmem:[%s844_s22] sm:$0xff] %vm231_vm2, %v714_v59 }
  0x10   : > { %385 = vperm.xlu2 %688, %v359_v3   ;;  %250 = vst [vmem:[#allocation1] ss:$2 sm:$0xff] %v248_v4  ;;  %v419_v18 = vld [vmem:[%s906_s3] sm:$0xff]  ;;  %v421_v19 = vld [vmem:[%s906_s3 + $0x10] sm:$0xff]  ;;  %v422_v21 = vld [vmem:[%s906_s3 + $0x18] sm:$0xff] }
  0x11   : > { %v424_v22 = vld [vmem:[%s906_s3 + $0x28] sm:$0xff]  ;;  %v423_v23 = vld [vmem:[%s906_s3 + $0x20] sm:$0xff]  ;;  %v657_v25 = vld [vmem:[%s904_s1 + $0x18] sm:$0xff]  ;;  %233 = vst.msk [vmem:[%s844_s22 + $0x8] sm:$0xff] %vm231_vm2, %v714_v59 }
  0x12   : > { %v655_v24 = vld [vmem:[%s904_s1 + $0x8] sm:$0xff]  ;;  %v425_v26 = vld [vmem:[%s906_s3 + $0x30] sm:$0xff]  ;;  %v426_v27 = vld [vmem:[%s906_s3 + $0x38] sm:$0xff]  ;;  %234 = vst.msk [vmem:[%s844_s22 + $0x10] sm:$0xff] %vm231_vm2, %v714_v59 }
  0x13   : > { %235 = vst.msk [vmem:[%s844_s22 + $0x18] sm:$0xff] %vm231_vm2, %v714_v59 }
  0x14   : > { %236 = vst.msk [vmem:[%s844_s22 + $0x20] sm:$0xff] %vm231_vm2, %v714_v59 }
  0x15   : > { %237 = vst.msk [vmem:[%s844_s22 + $0x28] sm:$0xff] %vm231_vm2, %v714_v59 }
  0x16   : > { %380 = vperm.xlu1 %687, %v358_v5   ;;  %370 = vperm.xlu0 %686, %v356_v6   ;;  %238 = vst.msk [vmem:[%s844_s22 + $0x30] sm:$0xff] %vm231_vm2, %v714_v59 }
  0x17   : > { %v251_v8 = vld.sshfl [vmem:[#allocation1] sm:$0xff pattern:$0x75316420]  ;;  %v252_v9 = vld.sshfl [vmem:[#allocation1 + $0x8] sm:$0xff pattern:$0x75316420] }
  0x18   : > { %390 = vperm.xlu2 %688, %v360_v7   ;;  %v255_v12 = vpack.c.bf16 %v251_v8, %v251_v8  ;;  %v256_v13 = vpack.c.bf16 %v252_v9, %v252_v9  ;;  %239 = vst.msk [vmem:[%s844_s22 + $0x38] sm:$0xff] %vm231_vm2, %v714_v59 }
  0x1a   : > { %v292_v14 = vsel %vm290_vm0, %v255_v12, 0  ;;  %v295_v15 = vsel %vm290_vm0, %v256_v13, 0 }
  0x1b   : > { %304 = vmatpush.bf16.msra.mxu0 %v292_v14  ;;  %658 = vmatpush.bf16.msra.mxu2 %v292_v14 }
  0x1c   : > { %333 = vmatpush.bf16.msra.mxu1 %v295_v15  ;;  %659 = vmatpush.bf16.msra.mxu3 %v295_v15 }
  0x1e   : > { %400 = vperm.xlu1 %687, %v362_v10   ;;  %395 = vperm.xlu0 %686, %v361_v11  }
  0x1f   : > { %642 = vmatmul.msk.bf16.vlgmr.msra.gmra.mxu0 %vm277_vm1, %v654_v16  ;;  %644 = vmatmul.msk.bf16.vlgmr.msra.gmra.mxu2 %vm277_vm1, %v656_v17 }
  0x20   : > { %429 = vperm.xlu2 %688, %v419_v18   ;;  %646 = vmatmul.msk.bf16.vlgmr.msra.gmra.mxu1 %vm277_vm1, %v654_v16 }
  0x21   : > { %648 = vmatmul.msk.bf16.vlgmr.msra.gmra.mxu3 %vm277_vm1, %v656_v17 }
  0x26   : > { %439 = vperm.xlu1 %687, %v421_v19   ;;  %434 = vperm.xlu0 %686, %v420_v20  }
  0x28   : > { %444 = vperm.xlu2 %688, %v422_v21  }
  0x2e   : > { %454 = vperm.xlu1 %687, %v424_v22   ;;  %449 = vperm.xlu0 %686, %v423_v23  }
  0x2f   : > { %643 = vmatmul.msk.bf16.gmra.mxu0 %vm277_vm1, %v655_v24  ;;  %645 = vmatmul.msk.bf16.gmra.mxu2 %vm277_vm1, %v657_v25 }
  0x30   : > { %459 = vperm.xlu2 %688, %v425_v26   ;;  %647 = vmatmul.msk.bf16.gmra.mxu1 %vm277_vm1, %v655_v24 }
  0x31   : > { %649 = vmatmul.msk.bf16.gmra.mxu3 %vm277_vm1, %v657_v25 }
  0x36   : > { %464 = vperm.xlu0 %686, %v426_v27  }
  0x6a   : > { %v386_v30 = vpop.permute.xlu2 %385 }
  0x72   : > { %v834_v33 = vpop.permute.xlu2 %390 }
  0x7a   : > { %v430_v39 = vpop.permute.xlu2 %429 }
  0x80   : > { %v366_v28 = vpop.permute.xlu0 %365  ;;  %v376_v31 = vpop.permute.xlu1 %375 }
  0x82   : > { %v445_v0 = vpop.permute.xlu2 %444 }
  0x88   : > { %v371_v29 = vpop.permute.xlu0 %370  ;;  %v836_v34 = vpop.permute.xlu1 %380 }
  0x8a   : > { %v460_v18 = vpop.permute.xlu2 %459 }
  0x90   : > { %v832_v32 = vpop.permute.xlu0 %395  ;;  %v839_v46 = vpop.permute.xlu1 %400 }
  0x98   : > { %v435_v35 = vpop.permute.xlu0 %434  ;;  %v440_v9 = vpop.permute.xlu1 %439 }
  0x9c   : > { %v306_v36 = vpop.f32.mrf.mxu0 }
  0x9d   : > { %v403_v37 = vmul.f32 %v366_v28, %v306_v36  ;;  %v335_v38 = vpop.f32.mrf.mxu1 }
  0x9e   : > { %v404_v40 = vmul.f32 %v366_v28, %v335_v38 }
  0x9f   : > { %v467_v41 = vadd.f32 %v430_v39, %v403_v37 }
  0xa0   : > { %v468_v42 = vadd.f32 %v430_v39, %v404_v40  ;;  %v450_v49 = vpop.permute.xlu0 %449 }
  0xa1   : > { %v483_v43 = vmax.f32 %v467_v41, 0.0 }
  0xa2   : > { %v484_v44 = vmax.f32 %v468_v42, 0.0  ;;  %v316_v45 = vpop.f32.mrf.mxu2 }
  0xa3   : > { %v411_v47 = vmul.f32 %v386_v30, %v316_v45 }
  0xa4   : > { %v345_v48 = vpop.f32.mrf.mxu3  ;;  %v308_v51 = vpop.f32.mrf.mxu0  ;;  %v507_v52 = vadd.f32 %v484_v44, %v483_v43 }
  0xa5   : > { %v412_v50 = vmul.f32 %v386_v30, %v345_v48  ;;  %v475_v53 = vadd.f32 %v450_v49, %v411_v47  ;;  %v405_v54 = vmul.f32 %v371_v29, %v308_v51  ;;  %v337_v55 = vpop.f32.mrf.mxu1 }
  0xa6   : > { %v406_v57 = vmul.f32 %v371_v29, %v337_v55  ;;  %508 = vadd.xlane.f32.xlu1 %v507_v52 }
  0xa7   : > { %v476_v56 = vadd.f32 %v450_v49, %v412_v50  ;;  %v469_v58 = vadd.f32 %v435_v35, %v405_v54  ;;  %v491_v60 = vmax.f32 %v475_v53, 0.0 }
  0xa8   : > { %v470_v62 = vadd.f32 %v435_v35, %v406_v57  ;;  %v465_v42 = vpop.permute.xlu0 %464  ;;  %v500_v57 = vld [vmem:[%s844_s22 + $0x8] sm:$0xff] }
  0xa9   : > { %v492_v61 = vmax.f32 %v476_v56, 0.0  ;;  %v485_v63 = vmax.f32 %v469_v58, 0.0  ;;  %v503_v56 = vld [vmem:[%s844_s22 + $0x20] sm:$0xff] }
  0xaa   : > { %v486_v1 = vmax.f32 %v470_v62, 0.0  ;;  %v318_v2 = vpop.f32.mrf.mxu2  ;;  %v501_v62 = vld [vmem:[%s844_s22 + $0x10] sm:$0xff] }
  0xab   : > { %v519_v5 = vadd.f32 %v492_v61, %v491_v60  ;;  %v413_v27 = vmul.f32 %v834_v33, %v318_v2  ;;  %v502_v2 = vld [vmem:[%s844_s22 + $0x18] sm:$0xff] }
  0xac   : > { %v347_v3 = vpop.f32.mrf.mxu3  ;;  %v311_v4 = vpop.f32.mrf.mxu0  ;;  %v510_v6 = vadd.f32 %v486_v1, %v485_v63  ;;  %v505_v1 = vld [vmem:[%s844_s22 + $0x30] sm:$0xff] }
  0xad   : > { %v407_v7 = vmul.f32 %v376_v31, %v311_v4  ;;  %v340_v8 = vpop.f32.mrf.mxu1  ;;  %v414_v29 = vmul.f32 %v834_v33, %v347_v3 }
  0xae   : > { %v408_v10 = vmul.f32 %v376_v31, %v340_v8  ;;  %520 = vadd.xlane.f32.xlu1 %v519_v5  ;;  %511 = vadd.xlane.f32.xlu2 %v510_v6 }
  0xaf   : > { %v471_v11 = vadd.f32 %v440_v9, %v407_v7  ;;  %v506_v7 = vld [vmem:[%s844_s22 + $0x38] sm:$0xff] }
  0xb0   : > { %v472_v12 = vadd.f32 %v440_v9, %v408_v10  ;;  %v504_v9 = vld [vmem:[%s844_s22 + $0x28] sm:$0xff] }
  0xb1   : > { %v487_v13 = vmax.f32 %v471_v11, 0.0 }
  0xb2   : > { %v488_v14 = vmax.f32 %v472_v12, 0.0  ;;  %v321_v15 = vpop.f32.mrf.mxu2 }
  0xb3   : > { %v415_v16 = vmul.f32 %v832_v32, %v321_v15 }
  0xb4   : > { %v350_v17 = vpop.f32.mrf.mxu3  ;;  %v313_v20 = vpop.f32.mrf.mxu0  ;;  %v513_v21 = vadd.f32 %v488_v14, %v487_v13 }
  0xb5   : > { %v416_v19 = vmul.f32 %v832_v32, %v350_v17  ;;  %v479_v22 = vadd.f32 %v460_v18, %v415_v16  ;;  %v409_v23 = vmul.f32 %v836_v34, %v313_v20  ;;  %v342_v24 = vpop.f32.mrf.mxu1  ;;  %v455_v32 = vpop.permute.xlu1 %454 }
  0xb6   : > { %v410_v26 = vmul.f32 %v836_v34, %v342_v24  ;;  %514 = vadd.xlane.f32.xlu0 %v513_v21  ;;  %v477_v39 = vadd.f32 %v455_v32, %v413_v27  ;;  %v478_v43 = vadd.f32 %v455_v32, %v414_v29 }
  0xb7   : > { %v480_v25 = vadd.f32 %v460_v18, %v416_v19  ;;  %v473_v28 = vadd.f32 %v445_v0, %v409_v23  ;;  %v495_v30 = vmax.f32 %v479_v22, 0.0 }
  0xb8   : > { %v474_v35 = vadd.f32 %v445_v0, %v410_v26  ;;  %v493_v49 = vmax.f32 %v477_v39, 0.0  ;;  %v494_v50 = vmax.f32 %v478_v43, 0.0 }
  0xb9   : > { %v496_v31 = vmax.f32 %v480_v25, 0.0  ;;  %v489_v36 = vmax.f32 %v473_v28, 0.0 }
  0xba   : > { %v490_v37 = vmax.f32 %v474_v35, 0.0  ;;  %v323_v38 = vpop.f32.mrf.mxu2  ;;  %v522_v53 = vadd.f32 %v494_v50, %v493_v49 }
  0xbb   : > { %v417_v40 = vmul.f32 %v839_v46, %v323_v38  ;;  %v525_v44 = vadd.f32 %v496_v31, %v495_v30 }
  0xbc   : > { %v352_v41 = vpop.f32.mrf.mxu3  ;;  %v516_v45 = vadd.f32 %v490_v37, %v489_v36 }
  0xbd   : > { %v418_v34 = vmul.f32 %v839_v46, %v352_v41  ;;  %v481_v33 = vadd.f32 %v465_v42, %v417_v40  ;;  %v499_v46 = vld [vmem:[%s844_s22] sm:$0xff] }
  0xbe   : > { %526 = vadd.xlane.f32.xlu0 %v525_v44  ;;  %517 = vadd.xlane.f32.xlu2 %v516_v45 }
  0xbf   : > { %v482_v47 = vadd.f32 %v465_v42, %v418_v34  ;;  %v497_v48 = vmax.f32 %v481_v33, 0.0 }
  0xc1   : > { %v498_v51 = vmax.f32 %v482_v47, 0.0 }
  0xc3   : > { %v528_v52 = vadd.f32 %v498_v51, %v497_v48 }
  0xc5   : > { %529 = vadd.xlane.f32.xlu1 %v528_v52 }
  0xc6   : > { %523 = vadd.xlane.f32.xlu2 %v522_v53 }
 0x119   : > { %v509_v54 = vpop.xlane.xlu1 %508 }
 0x11a   : > { %v531_v55 = vadd.f32 %v509_v54, %v499_v46 }
 0x11c   : > { %540 = vst.msk [vmem:[%s844_s22] sm:$0xff] %vm231_vm2, %v531_v55 }
 0x121   : > { %v521_v58 = vpop.xlane.xlu1 %520  ;;  %v512_v59 = vpop.xlane.xlu2 %511 }
 0x122   : > { %v535_v60 = vadd.f32 %v521_v58, %v503_v56  ;;  %v532_v61 = vadd.f32 %v512_v59, %v500_v57 }
 0x124   : > { %544 = vst.msk [vmem:[%s844_s22 + $0x20] sm:$0xff] %vm231_vm2, %v535_v60 }
 0x125   : > { %541 = vst.msk [vmem:[%s844_s22 + $0x8] sm:$0xff] %vm231_vm2, %v532_v61 }
 0x129   : > { %v515_v63 = vpop.xlane.xlu0 %514 }
 0x12a   : > { %v533_v0 = vadd.f32 %v515_v63, %v501_v62 }
 0x12c   : > { %542 = vst.msk [vmem:[%s844_s22 + $0x10] sm:$0xff] %vm231_vm2, %v533_v0 }
 0x131   : > { %v527_v3 = vpop.xlane.xlu0 %526  ;;  %v518_v4 = vpop.xlane.xlu2 %517 }
 0x132   : > { %v537_v5 = vadd.f32 %v527_v3, %v505_v1  ;;  %v534_v6 = vadd.f32 %v518_v4, %v502_v2 }
 0x134   : > { %546 = vst.msk [vmem:[%s844_s22 + $0x30] sm:$0xff] %vm231_vm2, %v537_v5 }
 0x135   : > { %543 = vst.msk [vmem:[%s844_s22 + $0x18] sm:$0xff] %vm231_vm2, %v534_v6 }
 0x138   : > { %v530_v8 = vpop.xlane.xlu1 %529 }
 0x139   : > { %v538_v10 = vadd.f32 %v530_v8, %v506_v7  ;;  %v524_v11 = vpop.xlane.xlu2 %523 }
 0x13a   : > { %v536_v12 = vadd.f32 %v524_v11, %v504_v9 }
 0x13b   : > { %547 = vst.msk [vmem:[%s844_s22 + $0x38] sm:$0xff] %vm231_vm2, %v538_v10 }
 0x13c   : > { %545 = vst.msk [vmem:[%s844_s22 + $0x28] sm:$0xff] %vm231_vm2, %v536_v12 }
 0x13d PF: > { %s14_s17 = sadd.s32 1, %s711_s17   ;;  %s908_s15 = smov %s707_s16 }
 0x13e   : > { %p11_p5 = scmp.ge.s32.totalorder %s14_s17, 4   ;;  %s909_s16 = smov %s911_s18 }
 0x140   :  { %13 = sbr.rel (!%p11_p5) target bundleno = 2 (0x2), region = 70 }

// kernel: squeeze_excitation.6
= control target key start
LH: loop header
LB: loop body
LE: loop exit
PB: predicated region body
PF: predicated region fallthrough
CT: control target
= control target key end

     0   :  { %s1355_s30 = smov 0   ;;  %s1357_s10 = smov 0   ;;  %s1585_s0 = inlined_call_operand.vmem [shape: f32[2,64,1], index: 0, kind: input, shape index: {}]   ;;  %s1586_s1 = inlined_call_operand.vmem [shape: f32[2,4,256], index: 1, kind: input, shape index: {}]   ;;  %s1587_s2 = inlined_call_operand.vmem [shape: bf16[64,4], index: 2, kind: input, shape index: {}]   ;;  %s1588_s3 = inlined_call_operand.vmem [shape: f32[64,1], index: 3, kind: input, shape index: {}]   ;;  %s1589_s4 = inlined_call_operand.vmem [shape: f32[64,1], index: 4, kind: input, shape index: {}]   ;;  %s1590_s5 = inlined_call_operand.vmem [shape: f32[4,64], index: 5, kind: input, shape index: {}]   ;;  %s1591_s6 = inlined_call_operand.vmem [shape: f32[64,4], index: 6, kind: input, shape index: {}]   ;;  %s1592_s7 = inlined_call_operand.vmem [shape: bf16[4,64], index: 7, kind: input, shape index: {}]   ;;  %s1593_s8 = inlined_call_operand.vmem [shape: f32[2,4,1], index: 8, kind: output, shape index: {0}]   ;;  %s1594_s9 = inlined_call_operand.vmem [shape: f32[2,4,1], index: 9, kind: output, shape index: {1}]  }
   0x1   :  { %s1359_s11 = smov 0  }
   0x2 LB: > { %s32_s12 = sadd.s32 1, %s1297_s10  ;;  %p1167_p0 = scmp.ge.s32.totalorder %s1301_s11, 1  ;;  %s1301_s11 = sphi %s1359_s11, %s20_s11   ;;  %s1297_s10 = sphi %s1357_s10, %s1596_s10   ;;  %s1293_s30 = sphi %s1355_s30, %s1595_s30  }
   0x3   : > { %p34_p1 = scmp.ge.s32.totalorder %s32_s12, 2  ;;  %p319_p2 = scmp.lt.s32.totalorder %s1301_s11, 3 }
   0x5   : > { %s1598_s12 = smov (%p34_p1, %s32_s12), 0  ;;  %p320_p3 = pnand %p1167_p0, %p319_p2 }
   0x6   : > { %p367_p4 = scmp.lt.s32.totalorder (!%p320_p3), %s1293_s30, 1 }
   0x7   : > { %323 = sbr.rel (%p320_p3) target bundleno = 780 (0x30c), region = 52 }
   0xc   : > { %s1600_s30 = smov (!%p367_p4, %s1293_s30), 1  ;;  %v406_v9 = vld [vmem:[%s1590_s5] sm:$0xf]  ;;  %vm407_vm0 = vcmask 523264   ;;  %vm465_vm1 = vcmask 1043456   ;;  %vm440_vm2 = vcmask 31744  }
   0xd   : > { %s1212_s13 = sshll.u32 %s1600_s30, 6  ;;  %s1213_s14 = sshll.u32 %s1600_s30, 3  ;;  %v432_v12 = vld [vmem:[%s1591_s6] sm:$0xff]  ;;  %v433_v13 = vld [vmem:[%s1591_s6 + $0x8] sm:$0xff]  ;;  %v434_v14 = vld [vmem:[%s1591_s6 + $0x10] sm:$0xff]  ;;  %vm721_vm3 = vcmask 1041408  }
   0xe   : > { %s371_s17 = scalar_lea.vmem %s1585_s0, %s1212_s13  ;;  %s380_s20 = scalar_lea.vmem %s1586_s1, %s1213_s14  ;;  %v435_v15 = vld [vmem:[%s1591_s6 + $0x18] sm:$0xff]  ;;  %v1303_v19 = vmov 0   ;;  %v856_v20 = vld [vmem:[%s1589_s4 + $0x30] sm:$0xff]  ;;  %v1214_v23 = vld [vmem:[%s1587_s2] sm:$0xff]  ;;  %vm662_vm7 = vcmask 7168  }
   0xf   : > { %v405_v0 = vld [vmem:[%s371_s17 + $0x38] sm:$0xff]  ;;  %v679_v1 = vld [vmem:[%s380_s20] sm:$0xff]  ;;  %v404_v2 = vld [vmem:[%s371_s17 + $0x30] sm:$0xff]  ;;  %1245 = vset.pattern.permute.xlu1 %v1303_v19  ;;  %1244 = vset.pattern.permute.xlu0 %v1303_v19  ;;  %s1172_s13 = sshll.u32 %s1600_s30, 2 }
  0x10   : > { %419 = vmatpush.msra.mxu0 %v405_v0  ;;  %681 = vst [vmem:[#allocation1] ss:$2 sm:$0xff] %v679_v1  ;;  %v403_v3 = vld [vmem:[%s371_s17 + $0x28] sm:$0xff]  ;;  %v402_v4 = vld [vmem:[%s371_s17 + $0x20] sm:$0xff]  ;;  %v401_v5 = vld [vmem:[%s371_s17 + $0x18] sm:$0xff]  ;;  %890 = vperm.xlu1 %1245, %v856_v20   ;;  %s385_s16 = scalar_lea.vmem %s1593_s8, %s1172_s13  ;;  %s389_s19 = scalar_lea.vmem %s1594_s9, %s1172_s13 }
  0x11   : > { %v400_v6 = vld [vmem:[%s371_s17 + $0x10] sm:$0xff]  ;;  %v399_v7 = vld [vmem:[%s371_s17 + $0x8] sm:$0xff]  ;;  %v398_v8 = vld [vmem:[%s371_s17] sm:$0xff]  ;;  %1246 = vset.pattern.permute.xlu2 %v1303_v19 }
  0x12   : > { %420 = vmatpush.msra.mxu0 %v404_v2  ;;  %v436_v25 = vld [vmem:[%s1591_s6 + $0x20] sm:$0xff]  ;;  %v857_v26 = vld [vmem:[%s1589_s4 + $0x38] sm:$0xff]  ;;  %v437_v27 = vld [vmem:[%s1591_s6 + $0x28] sm:$0xff] }
  0x13   : > { %v855_v28 = vld [vmem:[%s1589_s4 + $0x28] sm:$0xff]  ;;  %v438_v30 = vld [vmem:[%s1591_s6 + $0x30] sm:$0xff]  ;;  %v439_v31 = vld [vmem:[%s1591_s6 + $0x38] sm:$0xff] }
  0x14   : > { %421 = vmatpush.msra.mxu0 %v403_v3  ;;  %v1215_v29 = vld [vmem:[%s1587_s2 + $0x8] sm:$0xff]  ;;  %v792_v32 = vld [vmem:[%s1588_s3 + $0x30] sm:$0xff]  ;;  %v793_v35 = vld [vmem:[%s1588_s3 + $0x38] sm:$0xff] }
  0x15   : > { %826 = vperm.xlu0 %1244, %v792_v32   ;;  %v1216_v33 = vld [vmem:[%s1587_s2 + $0x10] sm:$0xff]  ;;  %v853_v36 = vld [vmem:[%s1589_s4 + $0x18] sm:$0xff]  ;;  %v854_v37 = vld [vmem:[%s1589_s4 + $0x20] sm:$0xff] }
  0x16   : > { %422 = vmatpush.msra.mxu0 %v402_v4  ;;  %v788_v34 = vld [vmem:[%s1588_s3 + $0x10] sm:$0xff]  ;;  %v1217_v38 = vld [vmem:[%s1587_s2 + $0x18] sm:$0xff]  ;;  %v786_v39 = vld [vmem:[%s1588_s3] sm:$0xff] }
  0x17   : > { %v682_v16 = vld.sshfl [vmem:[#allocation1] sm:$0xff pattern:$0x75316420]  ;;  %v683_v18 = vld.sshfl [vmem:[#allocation1 + $0x8] sm:$0xff pattern:$0x75316420] }
  0x18   : > { %423 = vmatpush.msra.mxu0 %v401_v5  ;;  %v686_v17 = vpack.c.bf16 %v682_v16, %v682_v16  ;;  %v687_v21 = vpack.c.bf16 %v683_v18, %v683_v18  ;;  %895 = vperm.xlu1 %1245, %v857_v26   ;;  %v852_v40 = vld [vmem:[%s1589_s4 + $0x10] sm:$0xff]  ;;  %v851_v41 = vld [vmem:[%s1589_s4 + $0x8] sm:$0xff]  ;;  %v790_v44 = vld [vmem:[%s1588_s3 + $0x20] sm:$0xff] }
  0x19   : > { %816 = vperm.xlu2 %1246, %v790_v44   ;;  %v850_v46 = vld [vmem:[%s1589_s4] sm:$0xff]  ;;  %v791_v49 = vld [vmem:[%s1588_s3 + $0x28] sm:$0xff]  ;;  %v789_v55 = vld [vmem:[%s1588_s3 + $0x18] sm:$0xff] }
  0x1a   : > { %424 = vmatpush.msra.mxu0 %v400_v6  ;;  %v723_v22 = vsel %vm721_vm3, %v686_v17, 0  ;;  %v726_v24 = vsel %vm721_vm3, %v687_v21, 0  ;;  %v787_v3 = vld [vmem:[%s1588_s3 + $0x8] sm:$0xff] }
  0x1b   : > { %735 = vmatpush.bf16.msra.mxu2 %v723_v22  ;;  %764 = vmatpush.bf16.msra.mxu3 %v726_v24 }
  0x1c   : > { %425 = vmatpush.msra.mxu0 %v399_v7 }
  0x1d   : > { %831 = vperm.xlu0 %1244, %v793_v35  }
  0x1e   : > { %426 = vmatpush.msra.mxu0 %v398_v8  ;;  %1200 = vmatmul.msk.bf16.vlgmr.msra.gmra.mxu2 %vm440_vm2, %v1214_v23 }
  0x1f   : > { %1174 = vmatmul.msk.f32.vlgmr.msra.gmra.mxu0 %vm407_vm0, %v406_v9  ;;  %1204 = vmatmul.msk.bf16.vlgmr.msra.gmra.mxu3 %vm440_vm2, %v1214_v23 }
  0x20   : > { %885 = vperm.xlu1 %1245, %v855_v28  }
  0x21   : > { %821 = vperm.xlu2 %1246, %v791_v49  }
  0x25   : > { %880 = vperm.xlu0 %1244, %v854_v37  }
  0x28   : > { %806 = vperm.xlu1 %1245, %v788_v34  }
  0x29   : > { %811 = vperm.xlu2 %1246, %v789_v55  }
  0x2d   : > { %870 = vperm.xlu0 %1244, %v852_v40  }
  0x2e   : > { %1201 = vmatmul.msk.bf16.gmra.mxu2 %vm440_vm2, %v1215_v29 }
  0x2f   : > { %1205 = vmatmul.msk.bf16.gmra.mxu3 %vm440_vm2, %v1215_v29 }
  0x30   : > { %875 = vperm.xlu1 %1245, %v853_v36  }
  0x31   : > { %801 = vperm.xlu2 %1246, %v787_v3  }
  0x35   : > { %860 = vperm.xlu0 %1244, %v850_v46  }
  0x38   : > { %796 = vperm.xlu1 %1245, %v786_v39  }
  0x3e   : > { %1202 = vmatmul.msk.bf16.gmra.mxu2 %vm440_vm2, %v1216_v33 }
  0x3f   : > { %1206 = vmatmul.msk.bf16.gmra.mxu3 %vm440_vm2, %v1216_v33 }
  0x40   : > { %865 = vperm.xlu1 %1245, %v851_v41  }
  0x4e   : > { %1203 = vmatmul.msk.bf16.gmra.mxu2 %vm440_vm2, %v1217_v38 }
  0x4f   : > { %1207 = vmatmul.msk.bf16.gmra.mxu3 %vm440_vm2, %v1217_v38 }
  0x9c   : > { %v428_v10 = vpop.f32.mrf.mxu0 }
  0x9d   : > { %v431_v11 = vmax.f32 %v428_v10, 0.0 }
  0x9f   : > { %1175 = vmatpush.msk.msra.mxu1 %vm465_vm1, %v431_v11 }
  0xa0   : > { %1176 = vmatmul.msk.f32.vlgmr.msra.gmra.mxu1 %vm440_vm2, %v432_v12 }
  0xa8   : > { %1177 = vmatmul.msk.f32.gmra.mxu1 %vm440_vm2, %v433_v13 }
  0xb0   : > { %1178 = vmatmul.msk.f32.gmra.mxu1 %vm440_vm2, %v434_v14 }
  0xb8   : > { %1179 = vmatmul.msk.f32.gmra.mxu1 %vm440_vm2, %v435_v15 }
  0xc0   : > { %1180 = vmatmul.msk.f32.gmra.mxu1 %vm440_vm2, %v436_v25 }
  0xc8   : > { %1181 = vmatmul.msk.f32.gmra.mxu1 %vm440_vm2, %v437_v27 }
  0xd0   : > { %1182 = vmatmul.msk.f32.gmra.mxu1 %vm440_vm2, %v438_v30 }
  0xd8   : > { %1183 = vmatmul.msk.f32.gmra.mxu1 %vm440_vm2, %v439_v31 }
 0x11d   : > { %v486_v42 = vpop.f32.mrf.mxu1 }
 0x11e   : > { %v510_v43 = vsub.f32 0.0, %v486_v42 }
 0x120   : > { %v518_v45 = vmul.f32 1.442695, %v510_v43 }
 0x122   : > { %1247 = vpow2.f32 %v518_v45 }
 0x125   : > { %v489_v47 = vpop.f32.mrf.mxu1 }
 0x126   : > { %v511_v48 = vsub.f32 0.0, %v489_v47 }
 0x128   : > { %v1248_v50 = vpop.eup %1247  ;;  %v520_v51 = vmul.f32 1.442695, %v511_v48 }
 0x129   : > { %v534_v52 = vadd.f32 1.0, %v1248_v50 }
 0x12a   : > { %1249 = vpow2.f32 %v520_v51 }
 0x12b   : > { %1251 = vrcp.f32 %v534_v52  ;;  %v553_v62 = vand.u32 2147483648, %v534_v52  ;;  %v551_v1 = vand.u32 2147483647, %v534_v52  ;;  %vm547_vm5 = vweird.f32 %v534_v52 }
 0x12d   : > { %v492_v53 = vpop.f32.mrf.mxu1  ;;  %v554_v8 = vor.u32 1.1754944e-38, %v553_v62  ;;  %vm552_vm8 = vcmp.eq.f32.partialorder %v551_v1, 8.507059e+37 }
 0x12e   : > { %v512_v54 = vsub.f32 0.0, %v492_v53 }
 0x130   : > { %v1250_v56 = vpop.eup %1249  ;;  %v522_v57 = vmul.f32 1.442695, %v512_v54 }
 0x131   : > { %v1252_v58 = vpop.eup %1251  ;;  %v535_v59 = vadd.f32 1.0, %v1250_v56 }
 0x132   : > { %v543_v60 = vmul.f32 %v1252_v58, %v534_v52  ;;  %1253 = vpow2.f32 %v522_v57  ;;  %vm548_vm4 = vweird.f32 %v1252_v58 }
 0x133   : > { %1255 = vrcp.f32 %v535_v59  ;;  %vm549_vm6 = vmor %vm547_vm5, %vm548_vm4  ;;  %v568_v14 = vand.u32 2147483648, %v535_v59  ;;  %v566_v17 = vand.u32 2147483647, %v535_v59  ;;  %vm562_vm10 = vweird.f32 %v535_v59 }
 0x134   : > { %v544_v61 = vsub.f32 1.0, %v543_v60 }
 0x135   : > { %v495_v63 = vpop.f32.mrf.mxu1  ;;  %v569_v23 = vor.u32 1.1754944e-38, %v568_v14  ;;  %vm567_vm12 = vcmp.eq.f32.partialorder %v566_v17, 8.507059e+37 }
 0x136   : > { %v545_v0 = vmul.f32 %v1252_v58, %v544_v61  ;;  %v513_v2 = vsub.f32 0.0, %v495_v63 }
 0x138   : > { %v1254_v4 = vpop.eup %1253  ;;  %v546_v5 = vadd.f32 %v1252_v58, %v545_v0  ;;  %v524_v6 = vmul.f32 1.442695, %v513_v2 }
 0x139   : > { %v1256_v7 = vpop.eup %1255  ;;  %v536_v9 = vadd.f32 1.0, %v1254_v4 }
 0x13a   : > { %v550_v10 = vsel %vm549_vm6, %v1252_v58, %v546_v5  ;;  %v558_v11 = vmul.f32 %v1256_v7, %v535_v59  ;;  %1257 = vpow2.f32 %v524_v6  ;;  %vm563_vm9 = vweird.f32 %v1256_v7 }
 0x13b   : > { %v555_v12 = vsel %vm552_vm8, %v554_v8, %v550_v10  ;;  %1259 = vrcp.f32 %v536_v9  ;;  %vm564_vm11 = vmor %vm562_vm10, %vm563_vm9  ;;  %v583_v30 = vand.u32 2147483648, %v536_v9  ;;  %v581_v33 = vand.u32 2147483647, %v536_v9 }
 0x13c   : > { %663 = vst.msk [vmem:[#allocation2] sm:$0xff] %vm662_vm7, %v555_v12  ;;  %v559_v13 = vsub.f32 1.0, %v558_v11  ;;  %vm577_vm14 = vweird.f32 %v536_v9 }
 0x13d   : > { %v498_v15 = vpop.f32.mrf.mxu1  ;;  %v584_v39 = vor.u32 1.1754944e-38, %v583_v30  ;;  %vm582_vm2 = vcmp.eq.f32.partialorder %v581_v33, 8.507059e+37 }
 0x13e   : > { %v560_v16 = vmul.f32 %v1256_v7, %v559_v13  ;;  %v514_v18 = vsub.f32 0.0, %v498_v15 }
 0x140   : > { %v1258_v19 = vpop.eup %1257  ;;  %v561_v20 = vadd.f32 %v1256_v7, %v560_v16  ;;  %v526_v21 = vmul.f32 1.442695, %v514_v18 }
 0x141   : > { %v1260_v22 = vpop.eup %1259  ;;  %v537_v24 = vadd.f32 1.0, %v1258_v19 }
 0x142   : > { %v565_v25 = vsel %vm564_vm11, %v1256_v7, %v561_v20  ;;  %v573_v26 = vmul.f32 %v1260_v22, %v536_v9  ;;  %1261 = vpow2.f32 %v526_v21  ;;  %vm578_vm13 = vweird.f32 %v1260_v22 }
 0x143   : > { %v570_v27 = vsel %vm567_vm12, %v569_v23, %v565_v25  ;;  %1263 = vrcp.f32 %v537_v24  ;;  %v930_v28 = vld [vmem:[#allocation2] sm:$0xff]  ;;  %vm579_vm15 = vmor %vm577_vm14, %vm578_vm13  ;;  %v598_v45 = vand.u32 2147483648, %v537_v24  ;;  %v596_v48 = vand.u32 2147483647, %v537_v24 }
 0x144   : > { %664 = vst.msk [vmem:[#allocation2 + $0x8] sm:$0xff] %vm662_vm7, %v570_v27  ;;  %v574_v29 = vsub.f32 1.0, %v573_v26  ;;  %940 = vperm.xlu1 %1245, %v930_v28   ;;  %vm592_vm4 = vweird.f32 %v537_v24 }
 0x145   : > { %v501_v31 = vpop.f32.mrf.mxu1  ;;  %v599_v54 = vor.u32 1.1754944e-38, %v598_v45  ;;  %vm597_vm6 = vcmp.eq.f32.partialorder %v596_v48, 8.507059e+37 }
 0x146   : > { %v575_v32 = vmul.f32 %v1260_v22, %v574_v29  ;;  %v515_v34 = vsub.f32 0.0, %v501_v31 }
 0x148   : > { %v1262_v35 = vpop.eup %1261  ;;  %v576_v36 = vadd.f32 %v1260_v22, %v575_v32  ;;  %v528_v37 = vmul.f32 1.442695, %v515_v34 }
 0x149   : > { %v1264_v38 = vpop.eup %1263  ;;  %v538_v40 = vadd.f32 1.0, %v1262_v35 }
 0x14a   : > { %v580_v41 = vsel %vm579_vm15, %v1260_v22, %v576_v36  ;;  %v588_v42 = vmul.f32 %v1264_v38, %v537_v24  ;;  %1265 = vpow2.f32 %v528_v37  ;;  %vm593_vm3 = vweird.f32 %v1264_v38 }
 0x14b   : > { %v585_v43 = vsel %vm582_vm2, %v584_v39, %v580_v41  ;;  %1267 = vrcp.f32 %v538_v40  ;;  %vm594_vm5 = vmor %vm592_vm4, %vm593_vm3  ;;  %v613_v60 = vand.u32 2147483648, %v538_v40  ;;  %v611_v63 = vand.u32 2147483647, %v538_v40  ;;  %v931_v45 = vld [vmem:[#allocation2 + $0x8] sm:$0xff] }
 0x14c   : > { %665 = vst.msk [vmem:[#allocation2 + $0x10] sm:$0xff] %vm662_vm7, %v585_v43  ;;  %v589_v44 = vsub.f32 1.0, %v588_v42  ;;  %vm607_vm9 = vweird.f32 %v538_v40 }
 0x14d   : > { %v504_v46 = vpop.f32.mrf.mxu1  ;;  %v614_v5 = vor.u32 1.1754944e-38, %v613_v60  ;;  %vm612_vm11 = vcmp.eq.f32.partialorder %v611_v63, 8.507059e+37 }
 0x14e   : > { %v590_v47 = vmul.f32 %v1264_v38, %v589_v44  ;;  %v516_v49 = vsub.f32 0.0, %v504_v46 }
 0x150   : > { %v1266_v50 = vpop.eup %1265  ;;  %v591_v51 = vadd.f32 %v1264_v38, %v590_v47  ;;  %v530_v52 = vmul.f32 1.442695, %v516_v49  ;;  %v737_v47 = vpop.f32.mrf.mxu2 }
 0x151   : > { %v1268_v53 = vpop.eup %1267  ;;  %v539_v55 = vadd.f32 1.0, %v1266_v50  ;;  %v1496_v49 = vpop.f32.mrf.mxu3 }
 0x152   : > { %v595_v56 = vsel %vm594_vm5, %v1264_v38, %v591_v51  ;;  %v603_v57 = vmul.f32 %v1268_v53, %v538_v40  ;;  %1269 = vpow2.f32 %v530_v52  ;;  %vm608_vm8 = vweird.f32 %v1268_v53  ;;  %v1500_v52 = vpop.permute.xlu1 %890 }
 0x153   : > { %v600_v58 = vsel %vm597_vm6, %v599_v54, %v595_v56  ;;  %1271 = vrcp.f32 %v539_v55  ;;  %vm609_vm10 = vmor %vm607_vm9, %vm608_vm8  ;;  %v628_v11 = vand.u32 2147483648, %v539_v55  ;;  %v626_v13 = vand.u32 2147483647, %v539_v55  ;;  %v932_v43 = vld [vmem:[#allocation2 + $0x10] sm:$0xff]  ;;  %v827_v54 = vpop.permute.xlu0 %826 }
 0x154   : > { %666 = vst.msk [vmem:[#allocation2 + $0x18] sm:$0xff] %vm662_vm7, %v600_v58  ;;  %v604_v59 = vsub.f32 1.0, %v603_v57  ;;  %vm622_vm13 = vweird.f32 %v539_v55 }
 0x155   : > { %v507_v61 = vpop.f32.mrf.mxu1  ;;  %v629_v17 = vor.u32 1.1754944e-38, %v628_v11  ;;  %vm627_vm15 = vcmp.eq.f32.partialorder %v626_v13, 8.507059e+37 }
 0x156   : > { %v605_v62 = vmul.f32 %v1268_v53, %v604_v59  ;;  %v517_v0 = vsub.f32 0.0, %v507_v61 }
 0x158   : > { %v1270_v1 = vpop.eup %1269  ;;  %v606_v2 = vadd.f32 %v1268_v53, %v605_v62  ;;  %v532_v3 = vmul.f32 1.442695, %v517_v0  ;;  %v739_v48 = vpop.f32.mrf.mxu2 }
 0x159   : > { %v1272_v4 = vpop.eup %1271  ;;  %v540_v6 = vadd.f32 1.0, %v1270_v1  ;;  %v1498_v51 = vpop.f32.mrf.mxu3 }
 0x15a   : > { %v610_v7 = vsel %vm609_vm10, %v1268_v53, %v606_v2  ;;  %v618_v8 = vmul.f32 %v1272_v4, %v539_v55  ;;  %1273 = vpow2.f32 %v532_v3  ;;  %vm623_vm12 = vweird.f32 %v1272_v4  ;;  %v817_v53 = vpop.permute.xlu2 %816  ;;  %v896_v57 = vpop.permute.xlu1 %895 }
 0x15b   : > { %v615_v9 = vsel %vm612_vm11, %v614_v5, %v610_v7  ;;  %1275 = vrcp.f32 %v540_v6  ;;  %vm624_vm14 = vmor %vm622_vm13, %vm623_vm12  ;;  %v643_v24 = vand.u32 2147483648, %v540_v6  ;;  %v641_v26 = vand.u32 2147483647, %v540_v6  ;;  %v933_v46 = vld [vmem:[#allocation2 + $0x18] sm:$0xff]  ;;  %v832_v59 = vpop.permute.xlu0 %831 }
 0x15c   : > { %667 = vst.msk [vmem:[#allocation2 + $0x20] sm:$0xff] %vm662_vm7, %v615_v9  ;;  %v619_v10 = vsub.f32 1.0, %v618_v8  ;;  %vm637_vm3 = vweird.f32 %v540_v6 }
 0x15d   : > { %v644_v29 = vor.u32 1.1754944e-38, %v643_v24  ;;  %vm642_vm5 = vcmp.eq.f32.partialorder %v641_v26, 8.507059e+37 }
 0x15e   : > { %v620_v12 = vmul.f32 %v1272_v4, %v619_v10 }
 0x160   : > { %v1274_v14 = vpop.eup %1273  ;;  %v621_v15 = vadd.f32 %v1272_v4, %v620_v12  ;;  %v742_v50 = vpop.f32.mrf.mxu2 }
 0x161   : > { %v1276_v16 = vpop.eup %1275  ;;  %v541_v18 = vadd.f32 1.0, %v1274_v14  ;;  %v1502_v56 = vpop.f32.mrf.mxu3 }
 0x162   : > { %v625_v19 = vsel %vm624_vm14, %v1272_v4, %v621_v15  ;;  %v633_v20 = vmul.f32 %v1276_v16, %v540_v6  ;;  %vm638_vm2 = vweird.f32 %v1276_v16  ;;  %v822_v58 = vpop.permute.xlu2 %821  ;;  %v1506_v62 = vpop.permute.xlu1 %885 }
 0x163   : > { %v630_v21 = vsel %vm627_vm15, %v629_v17, %v625_v19  ;;  %1277 = vrcp.f32 %v541_v18  ;;  %v934_v22 = vld [vmem:[#allocation2 + $0x20] sm:$0xff]  ;;  %vm639_vm4 = vmor %vm637_vm3, %vm638_vm2  ;;  %v658_v35 = vand.u32 2147483648, %v541_v18  ;;  %v656_v37 = vand.u32 2147483647, %v541_v18  ;;  %v881_v0 = vpop.permute.xlu0 %880 }
 0x164   : > { %668 = vst.msk [vmem:[#allocation2 + $0x28] sm:$0xff] %vm662_vm7, %v630_v21  ;;  %v634_v23 = vsub.f32 1.0, %v633_v20  ;;  %960 = vperm.xlu2 %1246, %v934_v22   ;;  %vm652_vm8 = vweird.f32 %v541_v18 }
 0x165   : > { %v659_v39 = vor.u32 1.1754944e-38, %v658_v35  ;;  %vm657_vm10 = vcmp.eq.f32.partialorder %v656_v37, 8.507059e+37 }
 0x166   : > { %v635_v25 = vmul.f32 %v1276_v16, %v634_v23 }
 0x168   : > { %v636_v27 = vadd.f32 %v1276_v16, %v635_v25  ;;  %v744_v55 = vpop.f32.mrf.mxu2 }
 0x169   : > { %v1278_v28 = vpop.eup %1277  ;;  %v1504_v61 = vpop.f32.mrf.mxu3 }
 0x16a   : > { %v640_v30 = vsel %vm639_vm4, %v1276_v16, %v636_v27  ;;  %v648_v31 = vmul.f32 %v1278_v28, %v541_v18  ;;  %vm653_vm6 = vweird.f32 %v1278_v28  ;;  %v1508_v63 = vpop.permute.xlu2 %811  ;;  %v1510_v3 = vpop.permute.xlu1 %806 }
 0x16b   : > { %v645_v32 = vsel %vm642_vm5, %v644_v29, %v640_v30  ;;  %v935_v33 = vld [vmem:[#allocation2 + $0x28] sm:$0xff]  ;;  %vm654_vm9 = vmor %vm652_vm8, %vm653_vm6  ;;  %v1514_v5 = vpop.permute.xlu0 %870  ;;  %v838_v25 = vmul.f32 %v1510_v3, %v742_v50  ;;  %v840_v26 = vmul.f32 %v1508_v63, %v744_v55 }
 0x16c   : > { %669 = vst.msk [vmem:[#allocation2 + $0x30] sm:$0xff] %vm662_vm7, %v645_v32  ;;  %v649_v34 = vsub.f32 1.0, %v648_v31  ;;  %965 = vperm.xlu0 %1244, %v935_v33  }
 0x16e   : > { %v650_v36 = vmul.f32 %v1278_v28, %v649_v34 }
 0x170   : > { %v651_v38 = vadd.f32 %v1278_v28, %v650_v36  ;;  %v747_v60 = vpop.f32.mrf.mxu2 }
 0x171   : > { %v776_v2 = vpop.f32.mrf.mxu3  ;;  %v842_v17 = vmul.f32 %v817_v53, %v747_v60 }
 0x172   : > { %v655_v40 = vsel %vm654_vm9, %v1278_v28, %v651_v38  ;;  %v1512_v4 = vpop.permute.xlu2 %801  ;;  %v1516_v8 = vpop.permute.xlu1 %875 }
 0x173   : > { %v660_v41 = vsel %vm657_vm10, %v659_v39, %v655_v40  ;;  %v936_v42 = vld [vmem:[#allocation2 + $0x30] sm:$0xff]  ;;  %v1520_v10 = vpop.permute.xlu0 %860  ;;  %v906_v22 = vadd.f32 %v881_v0, %v842_v17  ;;  %v836_v35 = vmul.f32 %v1512_v4, %v739_v48  ;;  %v904_v39 = vadd.f32 %v1516_v8, %v840_v26 }
 0x174   : > { %670 = vst.msk [vmem:[#allocation2 + $0x38] sm:$0xff] %vm662_vm7, %v660_v41  ;;  %970 = vperm.xlu2 %1246, %v936_v42   ;;  %v902_v40 = vadd.f32 %v1514_v5, %v838_v25  ;;  %vm395_vm7 = vcmask 3072  }
 0x175   : > { %v922_v31 = vmax.f32 %v906_v22, 0.0  ;;  %v920_v60 = vmax.f32 %v904_v39, 0.0 }
 0x176   : > { %v918_v55 = vmax.f32 %v902_v40, 0.0 }
 0x178   : > { %v749_v1 = vpop.f32.mrf.mxu2 }
 0x179   : > { %v778_v7 = vpop.f32.mrf.mxu3  ;;  %v844_v19 = vmul.f32 %v822_v58, %v749_v1 }
 0x17a   : > { %v797_v14 = vpop.permute.xlu1 %796  ;;  %v845_v48 = vmul.f32 %v822_v58, %v778_v7 }
 0x17b   : > { %v937_v44 = vld [vmem:[#allocation2 + $0x38] sm:$0xff]  ;;  %v908_v23 = vadd.f32 %v1506_v62, %v844_v19  ;;  %v834_v30 = vmul.f32 %v797_v14, %v737_v47 }
 0x17c   : > { %950 = vperm.xlu2 %1246, %v932_v43   ;;  %975 = vperm.xlu0 %1244, %v937_v44   ;;  %v843_v43 = vmul.f32 %v817_v53, %v776_v2  ;;  %v909_v58 = vadd.f32 %v1506_v62, %v845_v48 }
 0x17d   : > { %v924_v34 = vmax.f32 %v908_v23, 0.0 }
 0x17e   : > { %v907_v1 = vadd.f32 %v881_v0, %v843_v43  ;;  %v925_v26 = vmax.f32 %v909_v58, 0.0 }
 0x180   : > { %v752_v6 = vpop.f32.mrf.mxu2  ;;  %v923_v22 = vmax.f32 %v907_v1, 0.0 }
 0x181   : > { %v781_v13 = vpop.f32.mrf.mxu3  ;;  %v846_v15 = vmul.f32 %v827_v54, %v752_v6 }
 0x182   : > { %v866_v32 = vpop.permute.xlu1 %865  ;;  %v847_v44 = vmul.f32 %v827_v54, %v781_v13  ;;  %v841_v13 = vmul.f32 %v1508_v63, %v1504_v61  ;;  %v837_v61 = vmul.f32 %v1512_v4, %v1498_v51 }
 0x183   : > { %v910_v20 = vadd.f32 %v1500_v52, %v846_v15  ;;  %v900_v47 = vadd.f32 %v866_v32, %v836_v35 }
 0x184   : > { %945 = vperm.xlu2 %1246, %v931_v45   ;;  %955 = vperm.xlu0 %1244, %v933_v46   ;;  %v898_v45 = vadd.f32 %v1520_v10, %v834_v30  ;;  %v911_v6 = vadd.f32 %v1500_v52, %v847_v44  ;;  %v839_v52 = vmul.f32 %v1510_v3, %v1502_v56 }
 0x185   : > { %v926_v27 = vmax.f32 %v910_v20, 0.0  ;;  %v916_v54 = vmax.f32 %v900_v47, 0.0  ;;  %v905_v25 = vadd.f32 %v1516_v8, %v841_v13 }
 0x186   : > { %v927_v0 = vmax.f32 %v911_v6, 0.0 }
 0x188   : > { %v754_v11 = vpop.f32.mrf.mxu2 }
 0x189   : > { %v848_v16 = vmul.f32 %v832_v59, %v754_v11  ;;  %v783_v29 = vpop.f32.mrf.mxu3 }
 0x18a   : > { %v849_v38 = vmul.f32 %v832_v59, %v783_v29  ;;  %v921_v29 = vmax.f32 %v905_v25, 0.0 }
 0x18b   : > { %v912_v21 = vadd.f32 %v896_v57, %v848_v16  ;;  %v914_v16 = vmax.f32 %v898_v45, 0.0 }
 0x18c   : > { %v913_v50 = vadd.f32 %v896_v57, %v849_v38 }
 0x18d   : > { %v928_v28 = vmax.f32 %v912_v21, 0.0  ;;  %v835_v21 = vmul.f32 %v797_v14, %v1496_v49  ;;  %v1002_v49 = vld [vmem:[%s1592_s7] sm:$0x3] }
 0x18e   : > { %v929_v7 = vmax.f32 %v913_v50, 0.0 }
 0x18f   : > { %v899_v14 = vadd.f32 %v1520_v10, %v835_v21 }
 0x1b6   : > { %v941_v57 = vpop.permute.xlu1 %940 }
 0x1b7   : > { %v978_v23 = vmul.f32 %v941_v57, %v914_v16 }
 0x1be   : > { %v1518_v9 = vpop.permute.xlu2 %960 }
 0x1bf   : > { %v986_v46 = vmul.f32 %v1518_v9, %v922_v31  ;;  %v987_v8 = vmul.f32 %v1518_v9, %v923_v22  ;;  %v1304_v9 = vmov 0.0  }
 0x1c0   : > { %396 = vst.msk [vmem:[%s385_s16] sm:$0xf] %vm395_vm7, %v1304_v9 }
 0x1c1   : > { %397 = vst.msk [vmem:[%s389_s19] sm:$0xf] %vm395_vm7, %v1304_v9 }
 0x1c7   : > { %v1033_v45 = vld [vmem:[%s385_s16] sm:$0xf] }
 0x1c8   : > { %v1043_v47 = vld [vmem:[%s389_s19] sm:$0xf] }
 0x1ce   : > { %v1522_v12 = vpop.permute.xlu2 %970 }
 0x1cf   : > { %v990_v36 = vmul.f32 %v1522_v12, %v926_v27  ;;  %v991_v62 = vmul.f32 %v1522_v12, %v927_v0  ;;  %v903_v27 = vadd.f32 %v1514_v5, %v839_v52  ;;  %v915_v5 = vmax.f32 %v899_v14, 0.0 }
 0x1d1   : > { %v919_v51 = vmax.f32 %v903_v27, 0.0 }
 0x1d6   : > { %v1528_v24 = vpop.permute.xlu2 %950 }
 0x1d7   : > { %v982_v53 = vmul.f32 %v1528_v24, %v918_v55 }
 0x1de   : > { %v1524_v18 = vpop.permute.xlu0 %965  ;;  %v946_v11 = vpop.permute.xlu2 %945 }
 0x1df   : > { %v988_v41 = vmul.f32 %v1524_v18, %v924_v34  ;;  %v980_v17 = vmul.f32 %v946_v11, %v916_v54  ;;  %v989_v56 = vmul.f32 %v1524_v18, %v925_v26  ;;  %v983_v18 = vmul.f32 %v1528_v24, %v919_v51 }
 0x1e0   : > { %v979_v34 = vmul.f32 %v941_v57, %v915_v5 }
 0x1e1   : > { %v998_v59 = vpack.c.bf16 %v988_v41, %v986_v46  ;;  %v994_v63 = vpack.c.bf16 %v980_v17, %v978_v23  ;;  %v999_v4 = vpack.c.bf16 %v989_v56, %v987_v8 }
 0x1ee   : > { %v976_v33 = vpop.permute.xlu0 %975 }
 0x1ef   : > { %v992_v37 = vmul.f32 %v976_v33, %v928_v28  ;;  %v993_v20 = vmul.f32 %v976_v33, %v929_v7  ;;  %v901_v28 = vadd.f32 %v866_v32, %v837_v61 }
 0x1f1   : > { %v1000_v42 = vpack.c.bf16 %v992_v37, %v990_v36  ;;  %v1001_v3 = vpack.c.bf16 %v993_v20, %v991_v62  ;;  %v917_v30 = vmax.f32 %v901_v28, 0.0 }
 0x1f3   : > { %1011 = vmatpush.bf16.msrb.mxu0 %v1000_v42  ;;  %v981_v31 = vmul.f32 %v946_v11, %v917_v30 }
 0x1f5   : > { %v995_v10 = vpack.c.bf16 %v981_v31, %v979_v34 }
 0x1f6   : > { %v956_v15 = vpop.permute.xlu0 %955 }
 0x1f7   : > { %v984_v2 = vmul.f32 %v956_v15, %v920_v60  ;;  %1012 = vmatpush.bf16.msrb.mxu0 %v998_v59  ;;  %v985_v12 = vmul.f32 %v956_v15, %v921_v29 }
 0x1f9   : > { %v996_v19 = vpack.c.bf16 %v984_v2, %v982_v53  ;;  %v997_v33 = vpack.c.bf16 %v985_v12, %v983_v18 }
 0x1fb   : > { %1013 = vmatpush.bf16.msrb.mxu0 %v996_v19 }
 0x1ff   : > { %1014 = vmatpush.bf16.msrb.mxu0 %v994_v63 }
 0x202   : > { %1208 = vmatmul.msk.bf16.vlgmr.msrb.gmra.mxu0 %vm407_vm0, %v1002_v49 }
 0x203   : > { %1024 = vmatpush.bf16.msra.mxu0 %v1001_v3 }
 0x207   : > { %1025 = vmatpush.bf16.msra.mxu0 %v999_v4 }
 0x20b   : > { %1026 = vmatpush.bf16.msra.mxu0 %v997_v33 }
 0x20f   : > { %1027 = vmatpush.bf16.msra.mxu0 %v995_v10 }
 0x212   : > { %1209 = vmatmul.msk.bf16.vlgmr.msra.gmra.mxu0 %vm407_vm0, %v1002_v49 }
 0x27f   : > { %v1016_v24 = vpop.f32.mrf.mxu0 }
 0x280   : > { %v1044_v35 = vmul.f32 %v1016_v24, %v1016_v24  ;;  %v1035_v37 = vsel %vm465_vm1, %v1016_v24, 0.0 }
 0x282   : > { %v1046_v41 = vsel %vm465_vm1, %v1044_v35, 0.0 }
 0x287   : > { %v1018_v32 = vpop.f32.mrf.mxu0 }
 0x28f   : > { %v1029_v36 = vpop.f32.mrf.mxu0 }
 0x290   : > { %v1036_v38 = vsel %vm465_vm1, %v1029_v36, 0.0  ;;  %v1045_v39 = vmul.f32 %v1029_v36, %v1029_v36 }
 0x291   : > { %v1037_v40 = vadd.f32 %v1036_v38, %v1035_v37 }
 0x292   : > { %v1047_v42 = vsel %vm465_vm1, %v1045_v39, 0.0 }
 0x293   : > { %1038 = vadd.xlane.f32.xlu0 %v1037_v40  ;;  %v1048_v43 = vadd.f32 %v1047_v42, %v1046_v41 }
 0x295   : > { %1049 = vadd.xlane.f32.xlu1 %v1048_v43 }
 0x297   : > { %v1031_v44 = vpop.f32.mrf.mxu0 }
 0x306   : > { %v1039_v46 = vpop.xlane.xlu0 %1038 }
 0x307   : > { %v1040_v48 = vadd.f32 %v1039_v46, %v1033_v45 }
 0x308   : > { %v1050_v50 = vpop.xlane.xlu1 %1049 }
 0x309   : > { %1042 = vst.msk [vmem:[%s385_s16] sm:$0xf] %vm395_vm7, %v1040_v48  ;;  %v1051_v55 = vadd.f32 %v1050_v50, %v1043_v47 }
 0x30b   : > { %1052 = vst.msk [vmem:[%s389_s19] sm:$0xf] %vm395_vm7, %v1051_v55 }
 0x30c PF: > { %s20_s11 = sadd.s32 1, %s1301_s11   ;;  %s1595_s30 = smov %s1297_s10 }
 0x30d   : > { %p17_p5 = scmp.ge.s32.totalorder %s20_s11, 4   ;;  %s1596_s10 = smov %s1598_s12 }
 0x30f   :  { %19 = sbr.rel (!%p17_p5) target bundleno = 2 (0x2), region = 101 }

// kernel: squeeze_excitation.7
= control target key start
LH: loop header
LB: loop body
LE: loop exit
PB: predicated region body
PF: predicated region fallthrough
CT: control target
= control target key end

     0   :  { %s1379_s13 = smov 0   ;;  %s1381_s14 = smov 0   ;;  %s1608_s0 = inlined_call_operand.vmem [shape: f32[2,64,1], index: 0, kind: input, shape index: {}]   ;;  %s1609_s1 = inlined_call_operand.vmem [shape: f32[2,4,256], index: 1, kind: input, shape index: {}]   ;;  %s1610_s2 = inlined_call_operand.vmem [shape: bf16[64,4], index: 2, kind: input, shape index: {}]   ;;  %s1611_s3 = inlined_call_operand.vmem [shape: f32[64,1], index: 3, kind: input, shape index: {}]   ;;  %s1612_s4 = inlined_call_operand.vmem [shape: f32[64,1], index: 4, kind: input, shape index: {}]   ;;  %s1613_s5 = inlined_call_operand.vmem [shape: f32[4,64], index: 5, kind: input, shape index: {}]   ;;  %s1614_s6 = inlined_call_operand.vmem [shape: f32[64,4], index: 6, kind: input, shape index: {}]   ;;  %s1615_s7 = inlined_call_operand.vmem [shape: bf16[4,64], index: 7, kind: input, shape index: {}]   ;;  %s1616_s8 = inlined_call_operand.vmem [shape: f32[4,1], index: 8, kind: input, shape index: {}]   ;;  %s1617_s9 = inlined_call_operand.vmem [shape: f32[4,1], index: 9, kind: input, shape index: {}]   ;;  %s1618_s10 = inlined_call_operand.vmem [shape: f32[2,4,256], index: 10, kind: output, shape index: {}]  }
   0x1   :  { %s1383_s15 = smov 0  }
   0x2 LB: > { %s32_s16 = sadd.s32 1, %s1317_s14  ;;  %p1187_p0 = scmp.ge.s32.totalorder %s1321_s15, 1  ;;  %s1321_s15 = sphi %s1383_s15, %s20_s15   ;;  %s1317_s14 = sphi %s1381_s14, %s1620_s14   ;;  %s1313_s13 = sphi %s1379_s13, %s1619_s13  }
   0x3   : > { %p34_p1 = scmp.ge.s32.totalorder %s32_s16, 2  ;;  %p343_p2 = scmp.lt.s32.totalorder %s1321_s15, 3 }
   0x5   : > { %s1622_s16 = smov (%p34_p1, %s32_s16), 0  ;;  %p344_p3 = pnand %p1187_p0, %p343_p2 }
   0x6   : > { %p394_p4 = scmp.lt.s32.totalorder (!%p344_p3), %s1313_s13, 1 }
   0x7   : > { %347 = sbr.rel (%p344_p3) target bundleno = 666 (0x29a), region = 60 }
   0xc   : > { %s1624_s13 = smov (!%p394_p4, %s1313_s13), 1  ;;  %v432_v9 = vld [vmem:[%s1613_s5] sm:$0xf]  ;;  %vm433_vm0 = vcmask 523264   ;;  %vm491_vm1 = vcmask 1043456   ;;  %vm466_vm2 = vcmask 31744  }
   0xd   : > { %s1232_s17 = sshll.u32 %s1624_s13, 6  ;;  %s1233_s18 = sshll.u32 %s1624_s13, 3  ;;  %v458_v12 = vld [vmem:[%s1614_s6] sm:$0xff]  ;;  %v459_v13 = vld [vmem:[%s1614_s6 + $0x8] sm:$0xff]  ;;  %v460_v14 = vld [vmem:[%s1614_s6 + $0x10] sm:$0xff]  ;;  %vm747_vm3 = vcmask 1041408  }
   0xe   : > { %s398_s21 = scalar_lea.vmem %s1608_s0, %s1232_s17  ;;  %s407_s24 = scalar_lea.vmem %s1609_s1, %s1233_s18  ;;  %v461_v15 = vld [vmem:[%s1614_s6 + $0x18] sm:$0xff]  ;;  %v1323_v19 = vmov 0   ;;  %v882_v20 = vld [vmem:[%s1612_s4 + $0x30] sm:$0xff]  ;;  %v1235_v23 = vld [vmem:[%s1610_s2] sm:$0xff]  ;;  %vm688_vm7 = vcmask 7168  }
   0xf   : > { %v431_v0 = vld [vmem:[%s398_s21 + $0x38] sm:$0xff]  ;;  %v705_v1 = vld [vmem:[%s407_s24] sm:$0xff]  ;;  %v430_v2 = vld [vmem:[%s398_s21 + $0x30] sm:$0xff]  ;;  %1265 = vset.pattern.permute.xlu1 %v1323_v19  ;;  %1264 = vset.pattern.permute.xlu0 %v1323_v19  ;;  %s417_s11 = scalar_lea.vmem %s1618_s10, %s1233_s18 }
  0x10   : > { %445 = vmatpush.msra.mxu0 %v431_v0  ;;  %707 = vst [vmem:[#allocation1] ss:$2 sm:$0xff] %v705_v1  ;;  %v429_v3 = vld [vmem:[%s398_s21 + $0x28] sm:$0xff]  ;;  %v428_v4 = vld [vmem:[%s398_s21 + $0x20] sm:$0xff]  ;;  %v427_v5 = vld [vmem:[%s398_s21 + $0x18] sm:$0xff]  ;;  %916 = vperm.xlu1 %1265, %v882_v20  }
  0x11   : > { %v426_v6 = vld [vmem:[%s398_s21 + $0x10] sm:$0xff]  ;;  %v425_v7 = vld [vmem:[%s398_s21 + $0x8] sm:$0xff]  ;;  %v424_v8 = vld [vmem:[%s398_s21] sm:$0xff]  ;;  %1266 = vset.pattern.permute.xlu2 %v1323_v19 }
  0x12   : > { %446 = vmatpush.msra.mxu0 %v430_v2  ;;  %v462_v25 = vld [vmem:[%s1614_s6 + $0x20] sm:$0xff]  ;;  %v883_v26 = vld [vmem:[%s1612_s4 + $0x38] sm:$0xff]  ;;  %v463_v27 = vld [vmem:[%s1614_s6 + $0x28] sm:$0xff] }
  0x13   : > { %v881_v28 = vld [vmem:[%s1612_s4 + $0x28] sm:$0xff]  ;;  %v464_v30 = vld [vmem:[%s1614_s6 + $0x30] sm:$0xff]  ;;  %v465_v31 = vld [vmem:[%s1614_s6 + $0x38] sm:$0xff] }
  0x14   : > { %447 = vmatpush.msra.mxu0 %v429_v3  ;;  %v1236_v29 = vld [vmem:[%s1610_s2 + $0x8] sm:$0xff]  ;;  %v818_v32 = vld [vmem:[%s1611_s3 + $0x30] sm:$0xff]  ;;  %v819_v35 = vld [vmem:[%s1611_s3 + $0x38] sm:$0xff] }
  0x15   : > { %852 = vperm.xlu0 %1264, %v818_v32   ;;  %v1237_v33 = vld [vmem:[%s1610_s2 + $0x10] sm:$0xff]  ;;  %v879_v36 = vld [vmem:[%s1612_s4 + $0x18] sm:$0xff]  ;;  %v880_v37 = vld [vmem:[%s1612_s4 + $0x20] sm:$0xff] }
  0x16   : > { %448 = vmatpush.msra.mxu0 %v428_v4  ;;  %v814_v34 = vld [vmem:[%s1611_s3 + $0x10] sm:$0xff]  ;;  %v1238_v38 = vld [vmem:[%s1610_s2 + $0x18] sm:$0xff]  ;;  %v812_v39 = vld [vmem:[%s1611_s3] sm:$0xff] }
  0x17   : > { %v708_v16 = vld.sshfl [vmem:[#allocation1] sm:$0xff pattern:$0x75316420]  ;;  %v709_v18 = vld.sshfl [vmem:[#allocation1 + $0x8] sm:$0xff pattern:$0x75316420] }
  0x18   : > { %449 = vmatpush.msra.mxu0 %v427_v5  ;;  %v712_v17 = vpack.c.bf16 %v708_v16, %v708_v16  ;;  %v713_v21 = vpack.c.bf16 %v709_v18, %v709_v18  ;;  %921 = vperm.xlu1 %1265, %v883_v26   ;;  %v878_v40 = vld [vmem:[%s1612_s4 + $0x10] sm:$0xff]  ;;  %v877_v41 = vld [vmem:[%s1612_s4 + $0x8] sm:$0xff]  ;;  %v816_v44 = vld [vmem:[%s1611_s3 + $0x20] sm:$0xff] }
  0x19   : > { %842 = vperm.xlu2 %1266, %v816_v44   ;;  %v876_v46 = vld [vmem:[%s1612_s4] sm:$0xff]  ;;  %v817_v49 = vld [vmem:[%s1611_s3 + $0x28] sm:$0xff]  ;;  %v815_v55 = vld [vmem:[%s1611_s3 + $0x18] sm:$0xff] }
  0x1a   : > { %450 = vmatpush.msra.mxu0 %v426_v6  ;;  %v749_v22 = vsel %vm747_vm3, %v712_v17, 0  ;;  %v752_v24 = vsel %vm747_vm3, %v713_v21, 0  ;;  %v813_v3 = vld [vmem:[%s1611_s3 + $0x8] sm:$0xff] }
  0x1b   : > { %761 = vmatpush.bf16.msra.mxu2 %v749_v22  ;;  %790 = vmatpush.bf16.msra.mxu3 %v752_v24 }
  0x1c   : > { %451 = vmatpush.msra.mxu0 %v425_v7 }
  0x1d   : > { %857 = vperm.xlu0 %1264, %v819_v35  }
  0x1e   : > { %452 = vmatpush.msra.mxu0 %v424_v8  ;;  %1220 = vmatmul.msk.bf16.vlgmr.msra.gmra.mxu2 %vm466_vm2, %v1235_v23 }
  0x1f   : > { %1194 = vmatmul.msk.f32.vlgmr.msra.gmra.mxu0 %vm433_vm0, %v432_v9  ;;  %1224 = vmatmul.msk.bf16.vlgmr.msra.gmra.mxu3 %vm466_vm2, %v1235_v23 }
  0x20   : > { %911 = vperm.xlu1 %1265, %v881_v28  }
  0x21   : > { %847 = vperm.xlu2 %1266, %v817_v49  }
  0x25   : > { %906 = vperm.xlu0 %1264, %v880_v37  }
  0x28   : > { %832 = vperm.xlu1 %1265, %v814_v34  }
  0x29   : > { %837 = vperm.xlu2 %1266, %v815_v55  }
  0x2d   : > { %896 = vperm.xlu0 %1264, %v878_v40  }
  0x2e   : > { %1221 = vmatmul.msk.bf16.gmra.mxu2 %vm466_vm2, %v1236_v29 }
  0x2f   : > { %1225 = vmatmul.msk.bf16.gmra.mxu3 %vm466_vm2, %v1236_v29 }
  0x30   : > { %901 = vperm.xlu1 %1265, %v879_v36  }
  0x31   : > { %827 = vperm.xlu2 %1266, %v813_v3  }
  0x35   : > { %886 = vperm.xlu0 %1264, %v876_v46  }
  0x38   : > { %822 = vperm.xlu1 %1265, %v812_v39  }
  0x3e   : > { %1222 = vmatmul.msk.bf16.gmra.mxu2 %vm466_vm2, %v1237_v33 }
  0x3f   : > { %1226 = vmatmul.msk.bf16.gmra.mxu3 %vm466_vm2, %v1237_v33 }
  0x40   : > { %891 = vperm.xlu1 %1265, %v877_v41   ;;  %v1067_v41 = vld [vmem:[%s1617_s9] sm:$0xf] }
  0x4e   : > { %1223 = vmatmul.msk.bf16.gmra.mxu2 %vm466_vm2, %v1238_v38 }
  0x4f   : > { %1227 = vmatmul.msk.bf16.gmra.mxu3 %vm466_vm2, %v1238_v38 }
  0x9c   : > { %v454_v10 = vpop.f32.mrf.mxu0 }
  0x9d   : > { %v457_v11 = vmax.f32 %v454_v10, 0.0 }
  0x9f   : > { %1195 = vmatpush.msk.msra.mxu1 %vm491_vm1, %v457_v11 }
  0xa0   : > { %1196 = vmatmul.msk.f32.vlgmr.msra.gmra.mxu1 %vm466_vm2, %v458_v12 }
  0xa8   : > { %1197 = vmatmul.msk.f32.gmra.mxu1 %vm466_vm2, %v459_v13 }
  0xb0   : > { %1198 = vmatmul.msk.f32.gmra.mxu1 %vm466_vm2, %v460_v14 }
  0xb8   : > { %1199 = vmatmul.msk.f32.gmra.mxu1 %vm466_vm2, %v461_v15 }
  0xc0   : > { %1200 = vmatmul.msk.f32.gmra.mxu1 %vm466_vm2, %v462_v25 }
  0xc8   : > { %1201 = vmatmul.msk.f32.gmra.mxu1 %vm466_vm2, %v463_v27 }
  0xd0   : > { %1202 = vmatmul.msk.f32.gmra.mxu1 %vm466_vm2, %v464_v30 }
  0xd8   : > { %1203 = vmatmul.msk.f32.gmra.mxu1 %vm466_vm2, %v465_v31 }
 0x11d   : > { %v512_v42 = vpop.f32.mrf.mxu1 }
 0x11e   : > { %v536_v43 = vsub.f32 0.0, %v512_v42 }
 0x120   : > { %v544_v45 = vmul.f32 1.442695, %v536_v43 }
 0x122   : > { %1267 = vpow2.f32 %v544_v45 }
 0x125   : > { %v515_v47 = vpop.f32.mrf.mxu1 }
 0x126   : > { %v537_v48 = vsub.f32 0.0, %v515_v47 }
 0x128   : > { %v1268_v50 = vpop.eup %1267  ;;  %v546_v51 = vmul.f32 1.442695, %v537_v48 }
 0x129   : > { %v560_v52 = vadd.f32 1.0, %v1268_v50 }
 0x12a   : > { %1269 = vpow2.f32 %v546_v51 }
 0x12b   : > { %1271 = vrcp.f32 %v560_v52  ;;  %v579_v62 = vand.u32 2147483648, %v560_v52  ;;  %v577_v1 = vand.u32 2147483647, %v560_v52  ;;  %vm573_vm5 = vweird.f32 %v560_v52 }
 0x12d   : > { %v518_v53 = vpop.f32.mrf.mxu1  ;;  %v580_v8 = vor.u32 1.1754944e-38, %v579_v62  ;;  %vm578_vm8 = vcmp.eq.f32.partialorder %v577_v1, 8.507059e+37 }
 0x12e   : > { %v538_v54 = vsub.f32 0.0, %v518_v53 }
 0x130   : > { %v1270_v56 = vpop.eup %1269  ;;  %v548_v57 = vmul.f32 1.442695, %v538_v54 }
 0x131   : > { %v1272_v58 = vpop.eup %1271  ;;  %v561_v59 = vadd.f32 1.0, %v1270_v56 }
 0x132   : > { %v569_v60 = vmul.f32 %v1272_v58, %v560_v52  ;;  %1273 = vpow2.f32 %v548_v57  ;;  %vm574_vm4 = vweird.f32 %v1272_v58 }
 0x133   : > { %1275 = vrcp.f32 %v561_v59  ;;  %vm575_vm6 = vmor %vm573_vm5, %vm574_vm4  ;;  %v594_v14 = vand.u32 2147483648, %v561_v59  ;;  %v592_v17 = vand.u32 2147483647, %v561_v59  ;;  %vm588_vm10 = vweird.f32 %v561_v59 }
 0x134   : > { %v570_v61 = vsub.f32 1.0, %v569_v60 }
 0x135   : > { %v521_v63 = vpop.f32.mrf.mxu1  ;;  %v595_v23 = vor.u32 1.1754944e-38, %v594_v14  ;;  %vm593_vm12 = vcmp.eq.f32.partialorder %v592_v17, 8.507059e+37 }
 0x136   : > { %v571_v0 = vmul.f32 %v1272_v58, %v570_v61  ;;  %v539_v2 = vsub.f32 0.0, %v521_v63 }
 0x138   : > { %v1274_v4 = vpop.eup %1273  ;;  %v572_v5 = vadd.f32 %v1272_v58, %v571_v0  ;;  %v550_v6 = vmul.f32 1.442695, %v539_v2 }
 0x139   : > { %v1276_v7 = vpop.eup %1275  ;;  %v562_v9 = vadd.f32 1.0, %v1274_v4 }
 0x13a   : > { %v576_v10 = vsel %vm575_vm6, %v1272_v58, %v572_v5  ;;  %v584_v11 = vmul.f32 %v1276_v7, %v561_v59  ;;  %1277 = vpow2.f32 %v550_v6  ;;  %vm589_vm9 = vweird.f32 %v1276_v7 }
 0x13b   : > { %v581_v12 = vsel %vm578_vm8, %v580_v8, %v576_v10  ;;  %1279 = vrcp.f32 %v562_v9  ;;  %vm590_vm11 = vmor %vm588_vm10, %vm589_vm9  ;;  %v609_v30 = vand.u32 2147483648, %v562_v9  ;;  %v607_v33 = vand.u32 2147483647, %v562_v9 }
 0x13c   : > { %689 = vst.msk [vmem:[#allocation2] sm:$0xff] %vm688_vm7, %v581_v12  ;;  %v585_v13 = vsub.f32 1.0, %v584_v11  ;;  %vm603_vm14 = vweird.f32 %v562_v9 }
 0x13d   : > { %v524_v15 = vpop.f32.mrf.mxu1  ;;  %v610_v39 = vor.u32 1.1754944e-38, %v609_v30  ;;  %vm608_vm2 = vcmp.eq.f32.partialorder %v607_v33, 8.507059e+37 }
 0x13e   : > { %v586_v16 = vmul.f32 %v1276_v7, %v585_v13  ;;  %v540_v18 = vsub.f32 0.0, %v524_v15 }
 0x140   : > { %v1278_v19 = vpop.eup %1277  ;;  %v587_v20 = vadd.f32 %v1276_v7, %v586_v16  ;;  %v552_v21 = vmul.f32 1.442695, %v540_v18 }
 0x141   : > { %v1280_v22 = vpop.eup %1279  ;;  %v563_v24 = vadd.f32 1.0, %v1278_v19 }
 0x142   : > { %v591_v25 = vsel %vm590_vm11, %v1276_v7, %v587_v20  ;;  %v599_v26 = vmul.f32 %v1280_v22, %v562_v9  ;;  %1281 = vpow2.f32 %v552_v21  ;;  %vm604_vm13 = vweird.f32 %v1280_v22 }
 0x143   : > { %v596_v27 = vsel %vm593_vm12, %v595_v23, %v591_v25  ;;  %1283 = vrcp.f32 %v563_v24  ;;  %v956_v28 = vld [vmem:[#allocation2] sm:$0xff]  ;;  %vm605_vm15 = vmor %vm603_vm14, %vm604_vm13  ;;  %v624_v46 = vand.u32 2147483648, %v563_v24  ;;  %v622_v49 = vand.u32 2147483647, %v563_v24 }
 0x144   : > { %690 = vst.msk [vmem:[#allocation2 + $0x8] sm:$0xff] %vm688_vm7, %v596_v27  ;;  %v600_v29 = vsub.f32 1.0, %v599_v26  ;;  %966 = vperm.xlu1 %1265, %v956_v28   ;;  %vm618_vm4 = vweird.f32 %v563_v24 }
 0x145   : > { %v527_v31 = vpop.f32.mrf.mxu1  ;;  %v625_v55 = vor.u32 1.1754944e-38, %v624_v46  ;;  %vm623_vm6 = vcmp.eq.f32.partialorder %v622_v49, 8.507059e+37  ;;  %v763_v49 = vpop.f32.mrf.mxu2 }
 0x146   : > { %v601_v32 = vmul.f32 %v1280_v22, %v600_v29  ;;  %v541_v34 = vsub.f32 0.0, %v527_v31 }
 0x148   : > { %v1282_v35 = vpop.eup %1281  ;;  %v602_v36 = vadd.f32 %v1280_v22, %v601_v32  ;;  %v554_v37 = vmul.f32 1.442695, %v541_v34 }
 0x149   : > { %v1284_v38 = vpop.eup %1283  ;;  %v564_v40 = vadd.f32 1.0, %v1282_v35 }
 0x14a   : > { %v606_v42 = vsel %vm605_vm15, %v1280_v22, %v602_v36  ;;  %v614_v43 = vmul.f32 %v1284_v38, %v563_v24  ;;  %1285 = vpow2.f32 %v554_v37  ;;  %vm619_vm3 = vweird.f32 %v1284_v38 }
 0x14b   : > { %v611_v44 = vsel %vm608_vm2, %v610_v39, %v606_v42  ;;  %1287 = vrcp.f32 %v564_v40  ;;  %vm620_vm5 = vmor %vm618_vm4, %vm619_vm3  ;;  %v639_v61 = vand.u32 2147483648, %v564_v40  ;;  %v637_v0 = vand.u32 2147483647, %v564_v40  ;;  %v957_v46 = vld [vmem:[#allocation2 + $0x8] sm:$0xff] }
 0x14c   : > { %691 = vst.msk [vmem:[#allocation2 + $0x10] sm:$0xff] %vm688_vm7, %v611_v44  ;;  %v615_v45 = vsub.f32 1.0, %v614_v43  ;;  %1070 = vperm.xlu1 %1265, %v1067_v41   ;;  %vm633_vm9 = vweird.f32 %v564_v40 }
 0x14d   : > { %v530_v47 = vpop.f32.mrf.mxu1  ;;  %v640_v6 = vor.u32 1.1754944e-38, %v639_v61  ;;  %vm638_vm11 = vcmp.eq.f32.partialorder %v637_v0, 8.507059e+37 }
 0x14e   : > { %v616_v48 = vmul.f32 %v1284_v38, %v615_v45  ;;  %v542_v50 = vsub.f32 0.0, %v530_v47 }
 0x150   : > { %v1286_v51 = vpop.eup %1285  ;;  %v617_v52 = vadd.f32 %v1284_v38, %v616_v48  ;;  %v556_v53 = vmul.f32 1.442695, %v542_v50  ;;  %v1059_v48 = vld [vmem:[%s1616_s8] sm:$0xf]  ;;  %v765_v50 = vpop.f32.mrf.mxu2 }
 0x151   : > { %v1288_v54 = vpop.eup %1287  ;;  %v565_v56 = vadd.f32 1.0, %v1286_v51  ;;  %v1528_v51 = vpop.f32.mrf.mxu3 }
 0x152   : > { %v621_v57 = vsel %vm620_vm5, %v1284_v38, %v617_v52  ;;  %v629_v58 = vmul.f32 %v1288_v54, %v564_v40  ;;  %1289 = vpow2.f32 %v556_v53  ;;  %vm634_vm8 = vweird.f32 %v1288_v54 }
 0x153   : > { %v626_v59 = vsel %vm623_vm6, %v625_v55, %v621_v57  ;;  %1291 = vrcp.f32 %v565_v56  ;;  %vm635_vm10 = vmor %vm633_vm9, %vm634_vm8  ;;  %v654_v12 = vand.u32 2147483648, %v565_v56  ;;  %v652_v14 = vand.u32 2147483647, %v565_v56  ;;  %v958_v44 = vld [vmem:[#allocation2 + $0x10] sm:$0xff]  ;;  %v843_v55 = vpop.permute.xlu2 %842 }
 0x154   : > { %692 = vst.msk [vmem:[#allocation2 + $0x18] sm:$0xff] %vm688_vm7, %v626_v59  ;;  %v630_v60 = vsub.f32 1.0, %v629_v58  ;;  %vm648_vm13 = vweird.f32 %v565_v56 }
 0x155   : > { %v533_v62 = vpop.f32.mrf.mxu1  ;;  %v655_v18 = vor.u32 1.1754944e-38, %v654_v12  ;;  %vm653_vm15 = vcmp.eq.f32.partialorder %v652_v14, 8.507059e+37 }
 0x156   : > { %v631_v63 = vmul.f32 %v1288_v54, %v630_v60  ;;  %v543_v1 = vsub.f32 0.0, %v533_v62 }
 0x158   : > { %v1290_v2 = vpop.eup %1289  ;;  %v632_v3 = vadd.f32 %v1288_v54, %v631_v63  ;;  %v558_v4 = vmul.f32 1.442695, %v543_v1  ;;  %v768_v52 = vpop.f32.mrf.mxu2 }
 0x159   : > { %v1292_v5 = vpop.eup %1291  ;;  %v566_v7 = vadd.f32 1.0, %v1290_v2  ;;  %v1530_v53 = vpop.f32.mrf.mxu3 }
 0x15a   : > { %v636_v8 = vsel %vm635_vm10, %v1288_v54, %v632_v3  ;;  %v644_v9 = vmul.f32 %v1292_v5, %v565_v56  ;;  %1293 = vpow2.f32 %v558_v4  ;;  %vm649_vm12 = vweird.f32 %v1292_v5  ;;  %v1532_v54 = vpop.permute.xlu1 %916  ;;  %v853_v56 = vpop.permute.xlu0 %852 }
 0x15b   : > { %v641_v10 = vsel %vm638_vm11, %v640_v6, %v636_v8  ;;  %1295 = vrcp.f32 %v566_v7  ;;  %vm650_vm14 = vmor %vm648_vm13, %vm649_vm12  ;;  %v669_v25 = vand.u32 2147483648, %v566_v7  ;;  %v667_v27 = vand.u32 2147483647, %v566_v7  ;;  %v959_v47 = vld [vmem:[#allocation2 + $0x18] sm:$0xff]  ;;  %v848_v60 = vpop.permute.xlu2 %847 }
 0x15c   : > { %693 = vst.msk [vmem:[#allocation2 + $0x20] sm:$0xff] %vm688_vm7, %v641_v10  ;;  %v645_v11 = vsub.f32 1.0, %v644_v9  ;;  %vm663_vm3 = vweird.f32 %v566_v7 }
 0x15d   : > { %v670_v30 = vor.u32 1.1754944e-38, %v669_v25  ;;  %vm668_vm5 = vcmp.eq.f32.partialorder %v667_v27, 8.507059e+37 }
 0x15e   : > { %v646_v13 = vmul.f32 %v1292_v5, %v645_v11 }
 0x160   : > { %v1294_v15 = vpop.eup %1293  ;;  %v647_v16 = vadd.f32 %v1292_v5, %v646_v13  ;;  %v770_v57 = vpop.f32.mrf.mxu2 }
 0x161   : > { %v1296_v17 = vpop.eup %1295  ;;  %v567_v19 = vadd.f32 1.0, %v1294_v15  ;;  %v1534_v58 = vpop.f32.mrf.mxu3 }
 0x162   : > { %v651_v20 = vsel %vm650_vm14, %v1292_v5, %v647_v16  ;;  %v659_v21 = vmul.f32 %v1296_v17, %v566_v7  ;;  %vm664_vm2 = vweird.f32 %v1296_v17  ;;  %v922_v59 = vpop.permute.xlu1 %921  ;;  %v858_v61 = vpop.permute.xlu0 %857 }
 0x163   : > { %v656_v22 = vsel %vm653_vm15, %v655_v18, %v651_v20  ;;  %1297 = vrcp.f32 %v567_v19  ;;  %v960_v23 = vld [vmem:[#allocation2 + $0x20] sm:$0xff]  ;;  %vm665_vm4 = vmor %vm663_vm3, %vm664_vm2  ;;  %v684_v36 = vand.u32 2147483648, %v567_v19  ;;  %v682_v38 = vand.u32 2147483647, %v567_v19  ;;  %v1540_v1 = vpop.permute.xlu2 %837 }
 0x164   : > { %694 = vst.msk [vmem:[#allocation2 + $0x28] sm:$0xff] %vm688_vm7, %v656_v22  ;;  %v660_v24 = vsub.f32 1.0, %v659_v21  ;;  %986 = vperm.xlu2 %1266, %v960_v23   ;;  %vm678_vm8 = vweird.f32 %v567_v19 }
 0x165   : > { %v685_v40 = vor.u32 1.1754944e-38, %v684_v36  ;;  %vm683_vm10 = vcmp.eq.f32.partialorder %v682_v38, 8.507059e+37 }
 0x166   : > { %v661_v26 = vmul.f32 %v1296_v17, %v660_v24 }
 0x168   : > { %v662_v28 = vadd.f32 %v1296_v17, %v661_v26  ;;  %v773_v62 = vpop.f32.mrf.mxu2 }
 0x169   : > { %v1298_v29 = vpop.eup %1297  ;;  %v1536_v63 = vpop.f32.mrf.mxu3 }
 0x16a   : > { %v666_v31 = vsel %vm665_vm4, %v1296_v17, %v662_v28  ;;  %v674_v32 = vmul.f32 %v1298_v29, %v567_v19  ;;  %vm679_vm6 = vweird.f32 %v1298_v29  ;;  %v1538_v0 = vpop.permute.xlu1 %911  ;;  %v907_v2 = vpop.permute.xlu0 %906  ;;  %v868_v19 = vmul.f32 %v843_v55, %v773_v62 }
 0x16b   : > { %v671_v33 = vsel %vm668_vm5, %v670_v30, %v666_v31  ;;  %v961_v34 = vld [vmem:[#allocation2 + $0x28] sm:$0xff]  ;;  %vm680_vm9 = vmor %vm678_vm8, %vm679_vm6  ;;  %v1544_v6 = vpop.permute.xlu2 %827  ;;  %v866_v28 = vmul.f32 %v1540_v1, %v770_v57 }
 0x16c   : > { %695 = vst.msk [vmem:[#allocation2 + $0x30] sm:$0xff] %vm688_vm7, %v671_v33  ;;  %v675_v35 = vsub.f32 1.0, %v674_v32  ;;  %991 = vperm.xlu0 %1264, %v961_v34   ;;  %v932_v24 = vadd.f32 %v907_v2, %v868_v19 }
 0x16e   : > { %v676_v37 = vmul.f32 %v1298_v29, %v675_v35  ;;  %v948_v33 = vmax.f32 %v932_v24, 0.0 }
 0x170   : > { %v677_v39 = vadd.f32 %v1298_v29, %v676_v37  ;;  %v775_v3 = vpop.f32.mrf.mxu2  ;;  %v862_v37 = vmul.f32 %v1544_v6, %v765_v50 }
 0x171   : > { %v802_v4 = vpop.f32.mrf.mxu3  ;;  %v870_v21 = vmul.f32 %v848_v60, %v775_v3 }
 0x172   : > { %v681_v41 = vsel %vm680_vm9, %v1298_v29, %v677_v39  ;;  %v1542_v5 = vpop.permute.xlu1 %832  ;;  %v1546_v7 = vpop.permute.xlu0 %896 }
 0x173   : > { %v686_v42 = vsel %vm683_vm10, %v685_v40, %v681_v41  ;;  %v962_v43 = vld [vmem:[#allocation2 + $0x30] sm:$0xff]  ;;  %v934_v25 = vadd.f32 %v1538_v0, %v870_v21  ;;  %v864_v27 = vmul.f32 %v1542_v5, %v768_v52 }
 0x174   : > { %696 = vst.msk [vmem:[#allocation2 + $0x38] sm:$0xff] %vm688_vm7, %v686_v42  ;;  %996 = vperm.xlu2 %1266, %v962_v43  }
 0x175   : > { %v950_v36 = vmax.f32 %v934_v25, 0.0  ;;  %v928_v42 = vadd.f32 %v1546_v7, %v864_v27 }
 0x177   : > { %v944_v57 = vmax.f32 %v928_v42, 0.0 }
 0x178   : > { %v778_v8 = vpop.f32.mrf.mxu2 }
 0x179   : > { %v804_v9 = vpop.f32.mrf.mxu3  ;;  %v872_v17 = vmul.f32 %v853_v56, %v778_v8 }
 0x17a   : > { %v1548_v10 = vpop.permute.xlu1 %901  ;;  %v1552_v12 = vpop.permute.xlu0 %886  ;;  %v871_v50 = vmul.f32 %v848_v60, %v804_v9 }
 0x17b   : > { %v963_v45 = vld [vmem:[#allocation2 + $0x38] sm:$0xff]  ;;  %v936_v22 = vadd.f32 %v1532_v54, %v872_v17  ;;  %v930_v41 = vadd.f32 %v1548_v10, %v866_v28 }
 0x17c   : > { %976 = vperm.xlu2 %1266, %v958_v44   ;;  %1001 = vperm.xlu0 %1264, %v963_v45   ;;  %v869_v45 = vmul.f32 %v843_v55, %v802_v4  ;;  %v935_v60 = vadd.f32 %v1538_v0, %v871_v50 }
 0x17d   : > { %v952_v29 = vmax.f32 %v936_v22, 0.0  ;;  %v946_v62 = vmax.f32 %v930_v41, 0.0 }
 0x17e   : > { %v933_v3 = vadd.f32 %v907_v2, %v869_v45  ;;  %v951_v28 = vmax.f32 %v935_v60, 0.0 }
 0x180   : > { %v780_v13 = vpop.f32.mrf.mxu2  ;;  %v949_v24 = vmax.f32 %v933_v3, 0.0 }
 0x181   : > { %v807_v15 = vpop.f32.mrf.mxu3  ;;  %v874_v18 = vmul.f32 %v858_v61, %v780_v13 }
 0x182   : > { %v823_v16 = vpop.permute.xlu1 %822 }
 0x183   : > { %v938_v23 = vadd.f32 %v922_v59, %v874_v18  ;;  %v860_v32 = vmul.f32 %v823_v16, %v763_v49 }
 0x184   : > { %971 = vperm.xlu2 %1266, %v957_v46   ;;  %981 = vperm.xlu0 %1264, %v959_v47   ;;  %v873_v46 = vmul.f32 %v853_v56, %v807_v15  ;;  %v867_v15 = vmul.f32 %v1540_v1, %v1536_v63  ;;  %v863_v63 = vmul.f32 %v1544_v6, %v1530_v53 }
 0x185   : > { %v954_v30 = vmax.f32 %v938_v23, 0.0  ;;  %v924_v47 = vadd.f32 %v1552_v12, %v860_v32  ;;  %v861_v23 = vmul.f32 %v823_v16, %v1528_v51  ;;  %v1028_v51 = vld [vmem:[%s1615_s7] sm:$0x3] }
 0x186   : > { %v937_v8 = vadd.f32 %v1532_v54, %v873_v46  ;;  %v865_v54 = vmul.f32 %v1542_v5, %v1534_v58  ;;  %v931_v27 = vadd.f32 %v1548_v10, %v867_v15 }
 0x187   : > { %v940_v18 = vmax.f32 %v924_v47, 0.0  ;;  %v925_v16 = vadd.f32 %v1552_v12, %v861_v23 }
 0x188   : > { %v953_v2 = vmax.f32 %v937_v8, 0.0 }
 0x189   : > { %v809_v31 = vpop.f32.mrf.mxu3 }
 0x18a   : > { %v892_v34 = vpop.permute.xlu1 %891  ;;  %v875_v40 = vmul.f32 %v858_v61, %v809_v31  ;;  %v947_v31 = vmax.f32 %v931_v27, 0.0 }
 0x18b   : > { %v926_v49 = vadd.f32 %v892_v34, %v862_v37 }
 0x18c   : > { %1062 = vperm.xlu0 %1264, %v1059_v48   ;;  %v939_v52 = vadd.f32 %v922_v59, %v875_v40 }
 0x18d   : > { %v942_v56 = vmax.f32 %v926_v49, 0.0 }
 0x18e   : > { %v955_v9 = vmax.f32 %v939_v52, 0.0 }
 0x1b6   : > { %v967_v59 = vpop.permute.xlu1 %966 }
 0x1b7   : > { %v1004_v25 = vmul.f32 %v967_v59, %v940_v18 }
 0x1be   : > { %v1550_v11 = vpop.permute.xlu2 %986  ;;  %v1071_v41 = vpop.permute.xlu1 %1070 }
 0x1bf   : > { %v1012_v48 = vmul.f32 %v1550_v11, %v948_v33  ;;  %v1013_v10 = vmul.f32 %v1550_v11, %v949_v24 }
 0x1ce   : > { %v1554_v14 = vpop.permute.xlu2 %996 }
 0x1cf   : > { %v1016_v38 = vmul.f32 %v1554_v14, %v952_v29  ;;  %v1017_v0 = vmul.f32 %v1554_v14, %v953_v2  ;;  %v929_v29 = vadd.f32 %v1546_v7, %v865_v54  ;;  %v941_v7 = vmax.f32 %v925_v16, 0.0 }
 0x1d1   : > { %v945_v53 = vmax.f32 %v929_v29, 0.0 }
 0x1d6   : > { %v1560_v26 = vpop.permute.xlu2 %976 }
 0x1d7   : > { %v1008_v55 = vmul.f32 %v1560_v26, %v944_v57 }
 0x1de   : > { %v1556_v20 = vpop.permute.xlu0 %991  ;;  %v972_v13 = vpop.permute.xlu2 %971 }
 0x1df   : > { %v1014_v43 = vmul.f32 %v1556_v20, %v950_v36  ;;  %v1006_v19 = vmul.f32 %v972_v13, %v942_v56  ;;  %v1015_v58 = vmul.f32 %v1556_v20, %v951_v28  ;;  %v1009_v20 = vmul.f32 %v1560_v26, %v945_v53 }
 0x1e0   : > { %v1005_v36 = vmul.f32 %v967_v59, %v941_v7 }
 0x1e1   : > { %v1024_v61 = vpack.c.bf16 %v1014_v43, %v1012_v48  ;;  %v1020_v1 = vpack.c.bf16 %v1006_v19, %v1004_v25  ;;  %v1025_v6 = vpack.c.bf16 %v1015_v58, %v1013_v10 }
 0x1ee   : > { %v1002_v35 = vpop.permute.xlu0 %1001 }
 0x1ef   : > { %v1018_v39 = vmul.f32 %v1002_v35, %v954_v30  ;;  %v1019_v22 = vmul.f32 %v1002_v35, %v955_v9  ;;  %v927_v30 = vadd.f32 %v892_v34, %v863_v63 }
 0x1f1   : > { %v1026_v44 = vpack.c.bf16 %v1018_v39, %v1016_v38  ;;  %v1027_v5 = vpack.c.bf16 %v1019_v22, %v1017_v0  ;;  %v943_v32 = vmax.f32 %v927_v30, 0.0 }
 0x1f3   : > { %1037 = vmatpush.bf16.msrb.mxu0 %v1026_v44  ;;  %v1007_v33 = vmul.f32 %v972_v13, %v943_v32 }
 0x1f5   : > { %v1021_v12 = vpack.c.bf16 %v1007_v33, %v1005_v36 }
 0x1f6   : > { %v982_v17 = vpop.permute.xlu0 %981 }
 0x1f7   : > { %v1010_v4 = vmul.f32 %v982_v17, %v946_v62  ;;  %1038 = vmatpush.bf16.msrb.mxu0 %v1024_v61  ;;  %v1011_v14 = vmul.f32 %v982_v17, %v947_v31 }
 0x1f9   : > { %v1022_v21 = vpack.c.bf16 %v1010_v4, %v1008_v55  ;;  %v1023_v35 = vpack.c.bf16 %v1011_v14, %v1009_v20 }
 0x1fb   : > { %1039 = vmatpush.bf16.msrb.mxu0 %v1022_v21 }
 0x1fe   : > { %v1063_v37 = vpop.permute.xlu0 %1062 }
 0x1ff   : > { %1040 = vmatpush.bf16.msrb.mxu0 %v1020_v1 }
 0x202   : > { %1228 = vmatmul.msk.bf16.vlgmr.msrb.gmra.mxu0 %vm433_vm0, %v1028_v51 }
 0x203   : > { %1050 = vmatpush.bf16.msra.mxu0 %v1027_v5 }
 0x207   : > { %1051 = vmatpush.bf16.msra.mxu0 %v1025_v6 }
 0x20b   : > { %1052 = vmatpush.bf16.msra.mxu0 %v1023_v35 }
 0x20f   : > { %1053 = vmatpush.bf16.msra.mxu0 %v1021_v12 }
 0x212   : > { %1229 = vmatmul.msk.bf16.vlgmr.msra.gmra.mxu0 %vm433_vm0, %v1028_v51 }
 0x27f   : > { %v1042_v11 = vpop.f32.mrf.mxu0 }
 0x280   : > { %v1065_v38 = vmul.f32 %v1063_v37, %v1042_v11 }
 0x282   : > { %v1073_v42 = vadd.f32 %v1071_v41, %v1065_v38 }
 0x284   : > { %v1075_v44 = vmax.f32 %v1073_v42, 0.0 }
 0x287   : > { %v1044_v34 = vpop.f32.mrf.mxu0 }
 0x28f   : > { %v1055_v39 = vpop.f32.mrf.mxu0 }
 0x290   : > { %v1066_v40 = vmul.f32 %v1063_v37, %v1055_v39 }
 0x292   : > { %v1074_v26 = vadd.f32 %v1071_v41, %v1066_v40 }
 0x294   : > { %v1076_v43 = vmax.f32 %v1074_v26, 0.0 }
 0x296   : > { %v1079_v45 = vrot.slane %v1076_v43, 4 }
 0x297   : > { %v1057_v46 = vpop.f32.mrf.mxu0 }
 0x298   : > { %v1081_v47 = vsel %vm491_vm1, %v1075_v44, %v1079_v45 }
 0x299   : > { %1083 = vst [vmem:[%s417_s11] sm:$0xff] %v1081_v47 }
 0x29a PF: > { %s20_s15 = sadd.s32 1, %s1321_s15   ;;  %s1619_s13 = smov %s1317_s14 }
 0x29b   : > { %p17_p5 = scmp.ge.s32.totalorder %s20_s15, 4   ;;  %s1620_s14 = smov %s1622_s16 }
 0x29d   :  { %19 = sbr.rel (!%p17_p5) target bundleno = 2 (0x2), region = 97 }

</bundles_post_ra>
